<compile_context>
chip_gen: v7x
topology: tpu7x:2x2x1
jax: 0.10.0
libtpu: 0.0.40
codegen_flags: <defaults>
</compile_context>

<pallas_src>
import jax
import jax.numpy as jnp
from jax.experimental import pallas as pl
from jax.experimental.pallas import tpu as pltpu


def lstm_fc_kernel(x_ref,      # (T*Bp, D)   flattened time-major input
                   wih0_ref,   # (D, 4H)
                   whh0_ref,   # (H, 4H)
                   b0_ref,     # (1, 4H)
                   wih1_ref,   # (H, 4H)
                   whh1_ref,   # (H, 4H)
                   b1_ref,     # (1, 4H)
                   fcw_ref,    # (1, H)
                   fcb_ref,    # (1, 1)
                   out_ref):   # (Bp, 128)   lane-dense output
    Bp = out_ref.shape[0]
    T = x_ref.shape[0] // Bp
    G = whh0_ref.shape[1]          # 4H
    H = G // 4

    # ---- Hoist all weight / bias loads out of the recurrence (vreg-resident).
    whh0 = whh0_ref[...]                                   # (H, 4H)
    wih1 = wih1_ref[...]                                   # (H, 4H)
    whh1 = whh1_ref[...]                                   # (H, 4H)
    b1 = jnp.broadcast_to(b1_ref[...], (Bp, G))            # hoisted broadcast
    fcw = fcw_ref[...]                                     # (1, H)

    # ---- Layer-0 input projection for ALL timesteps in one matmul, kept as a
    #      register-resident value (T=8 vregs), off the serial critical path.
    ix = jnp.dot(x_ref[...], wih0_ref[...],
                 preferred_element_type=jnp.float32) + b0_ref[...]   # (T*Bp, 4H)

    def gates_to_state(g, c_prev):
        # sigmoid on the full (Bp, 4H) tile (covers i, f, o); tanh only on the
        # g quarter-slice -> less EUP work on the serial chain.
        sg = jax.nn.sigmoid(g)
        gg = jnp.tanh(g[:, 2 * H:3 * H])
        i = sg[:, 0 * H:1 * H]
        f = sg[:, 1 * H:2 * H]
        o = sg[:, 3 * H:4 * H]
        c = f * c_prev + i * gg
        h = o * jnp.tanh(c)
        return h, c

    zeros_h = jnp.zeros((Bp, H), jnp.float32)
    zeros_g = jnp.zeros((Bp, G), jnp.float32)
    c1 = c2 = zeros_h
    h2 = zeros_h
    rec1 = zeros_g        # h1_prev @ whh0   (zero initial state -> zero)
    rec2 = zeros_g        # h2_prev @ whh1

    # Statically unrolled recurrence; rec1/rec2 for step t+1 are issued as soon
    # as h1/h2 of step t exist, so they overlap the other layer's gate math.
    for t in range(T):
        ix_t = ix[t * Bp:(t + 1) * Bp, :]                  # static vreg slice
        g1 = ix_t + rec1
        h1, c1 = gates_to_state(g1, c1)
        if t + 1 < T:
            rec1 = jnp.dot(h1, whh0, preferred_element_type=jnp.float32)
        g2 = rec2 + jnp.dot(h1, wih1, preferred_element_type=jnp.float32) + b1
        h2, c2 = gates_to_state(g2, c2)
        if t + 1 < T:
            rec2 = jnp.dot(h2, whh1, preferred_element_type=jnp.float32)

    # ---- Linear(H, 1): VPU multiply + lane reduction (avoids an N=1 MXU
    #      matmul), written lane-dense; wrapper slices column 0.
    y = jnp.sum(h2 * fcw, axis=-1, keepdims=True) + fcb_ref[...]   # (Bp, 1)
    out_ref[...] = jnp.broadcast_to(y, out_ref.shape)


def neural_network_forward(x, params):
    """x: (B, T, input_size) float32  ->  (B, 1) float32"""
    B, T, D = x.shape
    H = params["whh0"].shape[0]
    Bp = ((B + 7) // 8) * 8            # pad batch to sublane granularity
    OUT_LANES = 128

    x_tbd = jnp.transpose(x, (1, 0, 2))                     # (T, B, D)
    if Bp != B:
        x_tbd = jnp.pad(x_tbd, ((0, 0), (0, Bp - B), (0, 0)))
    x_flat = x_tbd.reshape(T * Bp, D)                       # free row-major reshape

    flops = (2 * T * Bp * D * 4 * H                         # input projection
             + T * 3 * (2 * Bp * H * 4 * H)                 # whh0, wih1, whh1 dots
             + 2 * Bp * H)                                  # fc head
    transcendentals = T * 2 * (Bp * 4 * H + 2 * Bp * H)     # sigmoid tile + 2 tanh slices
    bytes_accessed = 4 * (x_flat.size + params["wih0"].size + params["whh0"].size
                          + params["b0"].size + params["wih1"].size
                          + params["whh1"].size + params["b1"].size
                          + params["fcw"].size + params["fcb"].size
                          + Bp * OUT_LANES)

    # All operands are tiny (<100 KiB total); whole-array VMEM residency is
    # safe even on v7x's 64 MiB VMEM.
    # TODO(synk): if T/B scale up (>= ~16 MiB double-buffered footprint on
    #             v7x), switch x to a T-chunked BlockSpec pipeline and set
    #             vmem_limit_bytes via pltpu.CompilerParams.
    vmem = pl.BlockSpec(memory_space=pltpu.MemorySpace.VMEM)
    out = pl.pallas_call(
        lstm_fc_kernel,
        out_shape=jax.ShapeDtypeStruct((Bp, OUT_LANES), jnp.float32),
        in_specs=[vmem] * 9,
        out_specs=vmem,
        cost_estimate=pl.CostEstimate(flops=flops,
                                      transcendentals=transcendentals,
                                      bytes_accessed=bytes_accessed),
    )(x_flat, params["wih0"], params["whh0"], params["b0"],
      params["wih1"], params["whh1"], params["b1"],
      params["fcw"], params["fcb"])
    return out[:B, :1]


def init_params(key, input_size, hidden_size):
    """Deterministic init mirroring PyTorch LSTM/Linear (U(-k, k), k=1/sqrt(H))."""
    H = hidden_size
    k = 1.0 / jnp.sqrt(jnp.float32(H))
    keys = jax.random.split(key, 10)

    def u(kk, shape):
        return jax.random.uniform(kk, shape, jnp.float32, -k, k)

    # layer 0
    w_ih0 = u(keys[0], (4 * H, input_size))
    w_hh0 = u(keys[1], (4 * H, H))
    b_ih0 = u(keys[2], (4 * H,))
    b_hh0 = u(keys[3], (4 * H,))
    # layer 1
    w_ih1 = u(keys[4], (4 * H, H))
    w_hh1 = u(keys[5], (4 * H, H))
    b_ih1 = u(keys[6], (4 * H,))
    b_hh1 = u(keys[7], (4 * H,))
    # fc
    fc_w = u(keys[8], (1, H))
    fc_b = u(keys[9], (1,))

    return {
        "wih0": w_ih0.T,                                   # (D, 4H)
        "whh0": w_hh0.T,                                   # (H, 4H)
        "b0": (b_ih0 + b_hh0)[None, :],                    # (1, 4H)
        "wih1": w_ih1.T,                                   # (H, 4H)
        "whh1": w_hh1.T,                                   # (H, 4H)
        "b1": (b_ih1 + b_hh1)[None, :],                    # (1, 4H)
        "fcw": fc_w,                                       # (1, H)
        "fcb": fc_b[None, :],                              # (1, 1)
    }


def reference_forward(x, params):
    """Pure-JAX reference of the PyTorch forward for correctness check."""
    B, T, D = x.shape
    H = params["whh0"].shape[0]

    def gates(g, c):
        i = jax.nn.sigmoid(g[:, 0 * H:1 * H])
        f = jax.nn.sigmoid(g[:, 1 * H:2 * H])
        gg = jnp.tanh(g[:, 2 * H:3 * H])
        o = jax.nn.sigmoid(g[:, 3 * H:4 * H])
        c = f * c + i * gg
        return o * jnp.tanh(c), c

    h1 = c1 = h2 = c2 = jnp.zeros((B, H), jnp.float32)
    for t in range(T):
        g1 = x[:, t, :] @ params["wih0"] + params["b0"] + h1 @ params["whh0"]
        h1, c1 = gates(g1, c1)
        g2 = h1 @ params["wih1"] + h2 @ params["whh1"] + params["b1"]
        h2, c2 = gates(g2, c2)
    return h2 @ params["fcw"].T + params["fcb"]


if __name__ == "__main__":
    B, T, INPUT_SIZE, HIDDEN = 2, 8, 16, 32

    key = jax.random.PRNGKey(0)
    kx, kp = jax.random.split(key)
    x = jax.random.normal(kx, (B, T, INPUT_SIZE), jnp.float32)
    params = init_params(kp, INPUT_SIZE, HIDDEN)

    out = neural_network_forward(x, params)
    out = jax.block_until_ready(out)

    ref = reference_forward(x, params)
    assert out.shape == (B, 1)
    assert jnp.allclose(out, ref, atol=1e-5, rtol=1e-5), (out, ref)

    print("KERNEL_OK")
</pallas_src>

<mosaic_0001>
module attributes {stable_mosaic.version = 11 : i64} {
  func.func @lstm_fc_kernel(%arg0: memref<64x16xf32, #tpu.memory_space<vmem>>, %arg1: memref<16x128xf32, #tpu.memory_space<vmem>>, %arg2: memref<32x128xf32, #tpu.memory_space<vmem>>, %arg3: memref<1x128xf32, #tpu.memory_space<vmem>>, %arg4: memref<32x128xf32, #tpu.memory_space<vmem>>, %arg5: memref<32x128xf32, #tpu.memory_space<vmem>>, %arg6: memref<1x128xf32, #tpu.memory_space<vmem>>, %arg7: memref<1x32xf32, #tpu.memory_space<vmem>>, %arg8: memref<1x1xf32, #tpu.memory_space<vmem>>, %arg9: memref<8x128xf32, #tpu.memory_space<vmem>>) attributes {dimension_semantics = [], scalar_prefetch = 0 : i64, scratch_operands = 0 : i64, tpu.core_type = #tpu.core_type<tc>} {
    %c0 = arith.constant 0 : index
    %c0_0 = arith.constant 0 : index
    %0 = vector.load %arg2[%c0, %c0_0] : memref<32x128xf32, #tpu.memory_space<vmem>>, vector<32x128xf32>
    %c0_1 = arith.constant 0 : index
    %c0_2 = arith.constant 0 : index
    %1 = vector.load %arg4[%c0_1, %c0_2] : memref<32x128xf32, #tpu.memory_space<vmem>>, vector<32x128xf32>
    %c0_3 = arith.constant 0 : index
    %c0_4 = arith.constant 0 : index
    %2 = vector.load %arg5[%c0_3, %c0_4] : memref<32x128xf32, #tpu.memory_space<vmem>>, vector<32x128xf32>
    %c0_5 = arith.constant 0 : index
    %c0_6 = arith.constant 0 : index
    %3 = vector.load %arg6[%c0_5, %c0_6] : memref<1x128xf32, #tpu.memory_space<vmem>>, vector<1x128xf32>
    %4 = vector.shape_cast %3 : vector<1x128xf32> to vector<1x128xf32>
    %5 = vector.broadcast %4 : vector<1x128xf32> to vector<8x128xf32>
    %c0_7 = arith.constant 0 : index
    %c0_8 = arith.constant 0 : index
    %6 = vector.load %arg7[%c0_7, %c0_8] : memref<1x32xf32, #tpu.memory_space<vmem>>, vector<1x32xf32>
    %c0_9 = arith.constant 0 : index
    %c0_10 = arith.constant 0 : index
    %7 = vector.load %arg0[%c0_9, %c0_10] : memref<64x16xf32, #tpu.memory_space<vmem>>, vector<64x16xf32>
    %c0_11 = arith.constant 0 : index
    %c0_12 = arith.constant 0 : index
    %8 = vector.load %arg1[%c0_11, %c0_12] : memref<16x128xf32, #tpu.memory_space<vmem>>, vector<16x128xf32>
    %cst = arith.constant dense<0.000000e+00> : vector<64x128xf32>
    %9 = tpu.matmul %7, %8, %cst {dimension_numbers = #tpu.dot_dimension_numbers<[1], [0], [0], [1], [0, 0, 1, 1], [], []>} : vector<64x16xf32>, vector<16x128xf32>, vector<64x128xf32> -> vector<64x128xf32>
    %c0_13 = arith.constant 0 : index
    %c0_14 = arith.constant 0 : index
    %10 = vector.load %arg3[%c0_13, %c0_14] : memref<1x128xf32, #tpu.memory_space<vmem>>, vector<1x128xf32>
    %11 = vector.broadcast %10 : vector<1x128xf32> to vector<64x128xf32>
    %12 = arith.addf %9, %11 : vector<64x128xf32>
    %cst_15 = arith.constant 0.000000e+00 : f32
    %13 = vector.broadcast %cst_15 : f32 to vector<8x32xf32>
    %cst_16 = arith.constant 0.000000e+00 : f32
    %14 = vector.broadcast %cst_16 : f32 to vector<8x128xf32>
    %15 = vector.extract_strided_slice %12 {offsets = [0, 0], sizes = [8, 128], strides = [1, 1]} : vector<64x128xf32> to vector<8x128xf32>
    %16 = arith.addf %15, %14 : vector<8x128xf32>
    %17 = arith.negf %16 : vector<8x128xf32>
    %18 = math.exp %17 : vector<8x128xf32>
    %cst_17 = arith.constant 1.000000e+00 : f32
    %19 = vector.broadcast %cst_17 : f32 to vector<8x128xf32>
    %20 = arith.addf %19, %18 : vector<8x128xf32>
    %21 = arith.divf %19, %20 : vector<8x128xf32>
    %22 = vector.extract_strided_slice %16 {offsets = [0, 64], sizes = [8, 32], strides = [1, 1]} : vector<8x128xf32> to vector<8x32xf32>
    %23 = math.tanh %22 : vector<8x32xf32>
    %24 = vector.extract_strided_slice %21 {offsets = [0, 0], sizes = [8, 32], strides = [1, 1]} : vector<8x128xf32> to vector<8x32xf32>
    %25 = vector.extract_strided_slice %21 {offsets = [0, 32], sizes = [8, 32], strides = [1, 1]} : vector<8x128xf32> to vector<8x32xf32>
    %26 = vector.extract_strided_slice %21 {offsets = [0, 96], sizes = [8, 32], strides = [1, 1]} : vector<8x128xf32> to vector<8x32xf32>
    %27 = arith.mulf %25, %13 : vector<8x32xf32>
    %28 = arith.mulf %24, %23 : vector<8x32xf32>
    %29 = arith.addf %27, %28 : vector<8x32xf32>
    %30 = math.tanh %29 : vector<8x32xf32>
    %31 = arith.mulf %26, %30 : vector<8x32xf32>
    %cst_18 = arith.constant dense<0.000000e+00> : vector<8x128xf32>
    %32 = tpu.matmul %31, %0, %cst_18 {dimension_numbers = #tpu.dot_dimension_numbers<[1], [0], [0], [1], [0, 0, 1, 1], [], []>} : vector<8x32xf32>, vector<32x128xf32>, vector<8x128xf32> -> vector<8x128xf32>
    %cst_19 = arith.constant dense<0.000000e+00> : vector<8x128xf32>
    %33 = tpu.matmul %31, %1, %cst_19 {dimension_numbers = #tpu.dot_dimension_numbers<[1], [0], [0], [1], [0, 0, 1, 1], [], []>} : vector<8x32xf32>, vector<32x128xf32>, vector<8x128xf32> -> vector<8x128xf32>
    %34 = arith.addf %14, %33 : vector<8x128xf32>
    %35 = arith.addf %34, %5 : vector<8x128xf32>
    %36 = arith.negf %35 : vector<8x128xf32>
    %37 = math.exp %36 : vector<8x128xf32>
    %cst_20 = arith.constant 1.000000e+00 : f32
    %38 = vector.broadcast %cst_20 : f32 to vector<8x128xf32>
    %39 = arith.addf %38, %37 : vector<8x128xf32>
    %40 = arith.divf %38, %39 : vector<8x128xf32>
    %41 = vector.extract_strided_slice %35 {offsets = [0, 64], sizes = [8, 32], strides = [1, 1]} : vector<8x128xf32> to vector<8x32xf32>
    %42 = math.tanh %41 : vector<8x32xf32>
    %43 = vector.extract_strided_slice %40 {offsets = [0, 0], sizes = [8, 32], strides = [1, 1]} : vector<8x128xf32> to vector<8x32xf32>
    %44 = vector.extract_strided_slice %40 {offsets = [0, 32], sizes = [8, 32], strides = [1, 1]} : vector<8x128xf32> to vector<8x32xf32>
    %45 = vector.extract_strided_slice %40 {offsets = [0, 96], sizes = [8, 32], strides = [1, 1]} : vector<8x128xf32> to vector<8x32xf32>
    %46 = arith.mulf %44, %13 : vector<8x32xf32>
    %47 = arith.mulf %43, %42 : vector<8x32xf32>
    %48 = arith.addf %46, %47 : vector<8x32xf32>
    %49 = math.tanh %48 : vector<8x32xf32>
    %50 = arith.mulf %45, %49 : vector<8x32xf32>
    %cst_21 = arith.constant dense<0.000000e+00> : vector<8x128xf32>
    %51 = tpu.matmul %50, %2, %cst_21 {dimension_numbers = #tpu.dot_dimension_numbers<[1], [0], [0], [1], [0, 0, 1, 1], [], []>} : vector<8x32xf32>, vector<32x128xf32>, vector<8x128xf32> -> vector<8x128xf32>
    %52 = vector.extract_strided_slice %12 {offsets = [8, 0], sizes = [8, 128], strides = [1, 1]} : vector<64x128xf32> to vector<8x128xf32>
    %53 = arith.addf %52, %32 : vector<8x128xf32>
    %54 = arith.negf %53 : vector<8x128xf32>
    %55 = math.exp %54 : vector<8x128xf32>
    %cst_22 = arith.constant 1.000000e+00 : f32
    %56 = vector.broadcast %cst_22 : f32 to vector<8x128xf32>
    %57 = arith.addf %56, %55 : vector<8x128xf32>
    %58 = arith.divf %56, %57 : vector<8x128xf32>
    %59 = vector.extract_strided_slice %53 {offsets = [0, 64], sizes = [8, 32], strides = [1, 1]} : vector<8x128xf32> to vector<8x32xf32>
    %60 = math.tanh %59 : vector<8x32xf32>
    %61 = vector.extract_strided_slice %58 {offsets = [0, 0], sizes = [8, 32], strides = [1, 1]} : vector<8x128xf32> to vector<8x32xf32>
    %62 = vector.extract_strided_slice %58 {offsets = [0, 32], sizes = [8, 32], strides = [1, 1]} : vector<8x128xf32> to vector<8x32xf32>
    %63 = vector.extract_strided_slice %58 {offsets = [0, 96], sizes = [8, 32], strides = [1, 1]} : vector<8x128xf32> to vector<8x32xf32>
    %64 = arith.mulf %62, %29 : vector<8x32xf32>
    %65 = arith.mulf %61, %60 : vector<8x32xf32>
    %66 = arith.addf %64, %65 : vector<8x32xf32>
    %67 = math.tanh %66 : vector<8x32xf32>
    %68 = arith.mulf %63, %67 : vector<8x32xf32>
    %cst_23 = arith.constant dense<0.000000e+00> : vector<8x128xf32>
    %69 = tpu.matmul %68, %0, %cst_23 {dimension_numbers = #tpu.dot_dimension_numbers<[1], [0], [0], [1], [0, 0, 1, 1], [], []>} : vector<8x32xf32>, vector<32x128xf32>, vector<8x128xf32> -> vector<8x128xf32>
    %cst_24 = arith.constant dense<0.000000e+00> : vector<8x128xf32>
    %70 = tpu.matmul %68, %1, %cst_24 {dimension_numbers = #tpu.dot_dimension_numbers<[1], [0], [0], [1], [0, 0, 1, 1], [], []>} : vector<8x32xf32>, vector<32x128xf32>, vector<8x128xf32> -> vector<8x128xf32>
    %71 = arith.addf %51, %70 : vector<8x128xf32>
    %72 = arith.addf %71, %5 : vector<8x128xf32>
    %73 = arith.negf %72 : vector<8x128xf32>
    %74 = math.exp %73 : vector<8x128xf32>
    %cst_25 = arith.constant 1.000000e+00 : f32
    %75 = vector.broadcast %cst_25 : f32 to vector<8x128xf32>
    %76 = arith.addf %75, %74 : vector<8x128xf32>
    %77 = arith.divf %75, %76 : vector<8x128xf32>
    %78 = vector.extract_strided_slice %72 {offsets = [0, 64], sizes = [8, 32], strides = [1, 1]} : vector<8x128xf32> to vector<8x32xf32>
    %79 = math.tanh %78 : vector<8x32xf32>
    %80 = vector.extract_strided_slice %77 {offsets = [0, 0], sizes = [8, 32], strides = [1, 1]} : vector<8x128xf32> to vector<8x32xf32>
    %81 = vector.extract_strided_slice %77 {offsets = [0, 32], sizes = [8, 32], strides = [1, 1]} : vector<8x128xf32> to vector<8x32xf32>
    %82 = vector.extract_strided_slice %77 {offsets = [0, 96], sizes = [8, 32], strides = [1, 1]} : vector<8x128xf32> to vector<8x32xf32>
    %83 = arith.mulf %81, %48 : vector<8x32xf32>
    %84 = arith.mulf %80, %79 : vector<8x32xf32>
    %85 = arith.addf %83, %84 : vector<8x32xf32>
    %86 = math.tanh %85 : vector<8x32xf32>
    %87 = arith.mulf %82, %86 : vector<8x32xf32>
    %cst_26 = arith.constant dense<0.000000e+00> : vector<8x128xf32>
    %88 = tpu.matmul %87, %2, %cst_26 {dimension_numbers = #tpu.dot_dimension_numbers<[1], [0], [0], [1], [0, 0, 1, 1], [], []>} : vector<8x32xf32>, vector<32x128xf32>, vector<8x128xf32> -> vector<8x128xf32>
    %89 = vector.extract_strided_slice %12 {offsets = [16, 0], sizes = [8, 128], strides = [1, 1]} : vector<64x128xf32> to vector<8x128xf32>
    %90 = arith.addf %89, %69 : vector<8x128xf32>
    %91 = arith.negf %90 : vector<8x128xf32>
    %92 = math.exp %91 : vector<8x128xf32>
    %cst_27 = arith.constant 1.000000e+00 : f32
    %93 = vector.broadcast %cst_27 : f32 to vector<8x128xf32>
    %94 = arith.addf %93, %92 : vector<8x128xf32>
    %95 = arith.divf %93, %94 : vector<8x128xf32>
    %96 = vector.extract_strided_slice %90 {offsets = [0, 64], sizes = [8, 32], strides = [1, 1]} : vector<8x128xf32> to vector<8x32xf32>
    %97 = math.tanh %96 : vector<8x32xf32>
    %98 = vector.extract_strided_slice %95 {offsets = [0, 0], sizes = [8, 32], strides = [1, 1]} : vector<8x128xf32> to vector<8x32xf32>
    %99 = vector.extract_strided_slice %95 {offsets = [0, 32], sizes = [8, 32], strides = [1, 1]} : vector<8x128xf32> to vector<8x32xf32>
    %100 = vector.extract_strided_slice %95 {offsets = [0, 96], sizes = [8, 32], strides = [1, 1]} : vector<8x128xf32> to vector<8x32xf32>
    %101 = arith.mulf %99, %66 : vector<8x32xf32>
    %102 = arith.mulf %98, %97 : vector<8x32xf32>
    %103 = arith.addf %101, %102 : vector<8x32xf32>
    %104 = math.tanh %103 : vector<8x32xf32>
    %105 = arith.mulf %100, %104 : vector<8x32xf32>
    %cst_28 = arith.constant dense<0.000000e+00> : vector<8x128xf32>
    %106 = tpu.matmul %105, %0, %cst_28 {dimension_numbers = #tpu.dot_dimension_numbers<[1], [0], [0], [1], [0, 0, 1, 1], [], []>} : vector<8x32xf32>, vector<32x128xf32>, vector<8x128xf32> -> vector<8x128xf32>
    %cst_29 = arith.constant dense<0.000000e+00> : vector<8x128xf32>
    %107 = tpu.matmul %105, %1, %cst_29 {dimension_numbers = #tpu.dot_dimension_numbers<[1], [0], [0], [1], [0, 0, 1, 1], [], []>} : vector<8x32xf32>, vector<32x128xf32>, vector<8x128xf32> -> vector<8x128xf32>
    %108 = arith.addf %88, %107 : vector<8x128xf32>
    %109 = arith.addf %108, %5 : vector<8x128xf32>
    %110 = arith.negf %109 : vector<8x128xf32>
    %111 = math.exp %110 : vector<8x128xf32>
    %cst_30 = arith.constant 1.000000e+00 : f32
    %112 = vector.broadcast %cst_30 : f32 to vector<8x128xf32>
    %113 = arith.addf %112, %111 : vector<8x128xf32>
    %114 = arith.divf %112, %113 : vector<8x128xf32>
    %115 = vector.extract_strided_slice %109 {offsets = [0, 64], sizes = [8, 32], strides = [1, 1]} : vector<8x128xf32> to vector<8x32xf32>
    %116 = math.tanh %115 : vector<8x32xf32>
    %117 = vector.extract_strided_slice %114 {offsets = [0, 0], sizes = [8, 32], strides = [1, 1]} : vector<8x128xf32> to vector<8x32xf32>
    %118 = vector.extract_strided_slice %114 {offsets = [0, 32], sizes = [8, 32], strides = [1, 1]} : vector<8x128xf32> to vector<8x32xf32>
    %119 = vector.extract_strided_slice %114 {offsets = [0, 96], sizes = [8, 32], strides = [1, 1]} : vector<8x128xf32> to vector<8x32xf32>
    %120 = arith.mulf %118, %85 : vector<8x32xf32>
    %121 = arith.mulf %117, %116 : vector<8x32xf32>
    %122 = arith.addf %120, %121 : vector<8x32xf32>
    %123 = math.tanh %122 : vector<8x32xf32>
    %124 = arith.mulf %119, %123 : vector<8x32xf32>
    %cst_31 = arith.constant dense<0.000000e+00> : vector<8x128xf32>
    %125 = tpu.matmul %124, %2, %cst_31 {dimension_numbers = #tpu.dot_dimension_numbers<[1], [0], [0], [1], [0, 0, 1, 1], [], []>} : vector<8x32xf32>, vector<32x128xf32>, vector<8x128xf32> -> vector<8x128xf32>
    %126 = vector.extract_strided_slice %12 {offsets = [24, 0], sizes = [8, 128], strides = [1, 1]} : vector<64x128xf32> to vector<8x128xf32>
    %127 = arith.addf %126, %106 : vector<8x128xf32>
    %128 = arith.negf %127 : vector<8x128xf32>
    %129 = math.exp %128 : vector<8x128xf32>
    %cst_32 = arith.constant 1.000000e+00 : f32
    %130 = vector.broadcast %cst_32 : f32 to vector<8x128xf32>
    %131 = arith.addf %130, %129 : vector<8x128xf32>
    %132 = arith.divf %130, %131 : vector<8x128xf32>
    %133 = vector.extract_strided_slice %127 {offsets = [0, 64], sizes = [8, 32], strides = [1, 1]} : vector<8x128xf32> to vector<8x32xf32>
    %134 = math.tanh %133 : vector<8x32xf32>
    %135 = vector.extract_strided_slice %132 {offsets = [0, 0], sizes = [8, 32], strides = [1, 1]} : vector<8x128xf32> to vector<8x32xf32>
    %136 = vector.extract_strided_slice %132 {offsets = [0, 32], sizes = [8, 32], strides = [1, 1]} : vector<8x128xf32> to vector<8x32xf32>
    %137 = vector.extract_strided_slice %132 {offsets = [0, 96], sizes = [8, 32], strides = [1, 1]} : vector<8x128xf32> to vector<8x32xf32>
    %138 = arith.mulf %136, %103 : vector<8x32xf32>
    %139 = arith.mulf %135, %134 : vector<8x32xf32>
    %140 = arith.addf %138, %139 : vector<8x32xf32>
    %141 = math.tanh %140 : vector<8x32xf32>
    %142 = arith.mulf %137, %141 : vector<8x32xf32>
    %cst_33 = arith.constant dense<0.000000e+00> : vector<8x128xf32>
    %143 = tpu.matmul %142, %0, %cst_33 {dimension_numbers = #tpu.dot_dimension_numbers<[1], [0], [0], [1], [0, 0, 1, 1], [], []>} : vector<8x32xf32>, vector<32x128xf32>, vector<8x128xf32> -> vector<8x128xf32>
    %cst_34 = arith.constant dense<0.000000e+00> : vector<8x128xf32>
    %144 = tpu.matmul %142, %1, %cst_34 {dimension_numbers = #tpu.dot_dimension_numbers<[1], [0], [0], [1], [0, 0, 1, 1], [], []>} : vector<8x32xf32>, vector<32x128xf32>, vector<8x128xf32> -> vector<8x128xf32>
    %145 = arith.addf %125, %144 : vector<8x128xf32>
    %146 = arith.addf %145, %5 : vector<8x128xf32>
    %147 = arith.negf %146 : vector<8x128xf32>
    %148 = math.exp %147 : vector<8x128xf32>
    %cst_35 = arith.constant 1.000000e+00 : f32
    %149 = vector.broadcast %cst_35 : f32 to vector<8x128xf32>
    %150 = arith.addf %149, %148 : vector<8x128xf32>
    %151 = arith.divf %149, %150 : vector<8x128xf32>
    %152 = vector.extract_strided_slice %146 {offsets = [0, 64], sizes = [8, 32], strides = [1, 1]} : vector<8x128xf32> to vector<8x32xf32>
    %153 = math.tanh %152 : vector<8x32xf32>
    %154 = vector.extract_strided_slice %151 {offsets = [0, 0], sizes = [8, 32], strides = [1, 1]} : vector<8x128xf32> to vector<8x32xf32>
    %155 = vector.extract_strided_slice %151 {offsets = [0, 32], sizes = [8, 32], strides = [1, 1]} : vector<8x128xf32> to vector<8x32xf32>
    %156 = vector.extract_strided_slice %151 {offsets = [0, 96], sizes = [8, 32], strides = [1, 1]} : vector<8x128xf32> to vector<8x32xf32>
    %157 = arith.mulf %155, %122 : vector<8x32xf32>
    %158 = arith.mulf %154, %153 : vector<8x32xf32>
    %159 = arith.addf %157, %158 : vector<8x32xf32>
    %160 = math.tanh %159 : vector<8x32xf32>
    %161 = arith.mulf %156, %160 : vector<8x32xf32>
    %cst_36 = arith.constant dense<0.000000e+00> : vector<8x128xf32>
    %162 = tpu.matmul %161, %2, %cst_36 {dimension_numbers = #tpu.dot_dimension_numbers<[1], [0], [0], [1], [0, 0, 1, 1], [], []>} : vector<8x32xf32>, vector<32x128xf32>, vector<8x128xf32> -> vector<8x128xf32>
    %163 = vector.extract_strided_slice %12 {offsets = [32, 0], sizes = [8, 128], strides = [1, 1]} : vector<64x128xf32> to vector<8x128xf32>
    %164 = arith.addf %163, %143 : vector<8x128xf32>
    %165 = arith.negf %164 : vector<8x128xf32>
    %166 = math.exp %165 : vector<8x128xf32>
    %cst_37 = arith.constant 1.000000e+00 : f32
    %167 = vector.broadcast %cst_37 : f32 to vector<8x128xf32>
    %168 = arith.addf %167, %166 : vector<8x128xf32>
    %169 = arith.divf %167, %168 : vector<8x128xf32>
    %170 = vector.extract_strided_slice %164 {offsets = [0, 64], sizes = [8, 32], strides = [1, 1]} : vector<8x128xf32> to vector<8x32xf32>
    %171 = math.tanh %170 : vector<8x32xf32>
    %172 = vector.extract_strided_slice %169 {offsets = [0, 0], sizes = [8, 32], strides = [1, 1]} : vector<8x128xf32> to vector<8x32xf32>
    %173 = vector.extract_strided_slice %169 {offsets = [0, 32], sizes = [8, 32], strides = [1, 1]} : vector<8x128xf32> to vector<8x32xf32>
    %174 = vector.extract_strided_slice %169 {offsets = [0, 96], sizes = [8, 32], strides = [1, 1]} : vector<8x128xf32> to vector<8x32xf32>
    %175 = arith.mulf %173, %140 : vector<8x32xf32>
    %176 = arith.mulf %172, %171 : vector<8x32xf32>
    %177 = arith.addf %175, %176 : vector<8x32xf32>
    %178 = math.tanh %177 : vector<8x32xf32>
    %179 = arith.mulf %174, %178 : vector<8x32xf32>
    %cst_38 = arith.constant dense<0.000000e+00> : vector<8x128xf32>
    %180 = tpu.matmul %179, %0, %cst_38 {dimension_numbers = #tpu.dot_dimension_numbers<[1], [0], [0], [1], [0, 0, 1, 1], [], []>} : vector<8x32xf32>, vector<32x128xf32>, vector<8x128xf32> -> vector<8x128xf32>
    %cst_39 = arith.constant dense<0.000000e+00> : vector<8x128xf32>
    %181 = tpu.matmul %179, %1, %cst_39 {dimension_numbers = #tpu.dot_dimension_numbers<[1], [0], [0], [1], [0, 0, 1, 1], [], []>} : vector<8x32xf32>, vector<32x128xf32>, vector<8x128xf32> -> vector<8x128xf32>
    %182 = arith.addf %162, %181 : vector<8x128xf32>
    %183 = arith.addf %182, %5 : vector<8x128xf32>
    %184 = arith.negf %183 : vector<8x128xf32>
    %185 = math.exp %184 : vector<8x128xf32>
    %cst_40 = arith.constant 1.000000e+00 : f32
    %186 = vector.broadcast %cst_40 : f32 to vector<8x128xf32>
    %187 = arith.addf %186, %185 : vector<8x128xf32>
    %188 = arith.divf %186, %187 : vector<8x128xf32>
    %189 = vector.extract_strided_slice %183 {offsets = [0, 64], sizes = [8, 32], strides = [1, 1]} : vector<8x128xf32> to vector<8x32xf32>
    %190 = math.tanh %189 : vector<8x32xf32>
    %191 = vector.extract_strided_slice %188 {offsets = [0, 0], sizes = [8, 32], strides = [1, 1]} : vector<8x128xf32> to vector<8x32xf32>
    %192 = vector.extract_strided_slice %188 {offsets = [0, 32], sizes = [8, 32], strides = [1, 1]} : vector<8x128xf32> to vector<8x32xf32>
    %193 = vector.extract_strided_slice %188 {offsets = [0, 96], sizes = [8, 32], strides = [1, 1]} : vector<8x128xf32> to vector<8x32xf32>
    %194 = arith.mulf %192, %159 : vector<8x32xf32>
    %195 = arith.mulf %191, %190 : vector<8x32xf32>
    %196 = arith.addf %194, %195 : vector<8x32xf32>
    %197 = math.tanh %196 : vector<8x32xf32>
    %198 = arith.mulf %193, %197 : vector<8x32xf32>
    %cst_41 = arith.constant dense<0.000000e+00> : vector<8x128xf32>
    %199 = tpu.matmul %198, %2, %cst_41 {dimension_numbers = #tpu.dot_dimension_numbers<[1], [0], [0], [1], [0, 0, 1, 1], [], []>} : vector<8x32xf32>, vector<32x128xf32>, vector<8x128xf32> -> vector<8x128xf32>
    %200 = vector.extract_strided_slice %12 {offsets = [40, 0], sizes = [8, 128], strides = [1, 1]} : vector<64x128xf32> to vector<8x128xf32>
    %201 = arith.addf %200, %180 : vector<8x128xf32>
    %202 = arith.negf %201 : vector<8x128xf32>
    %203 = math.exp %202 : vector<8x128xf32>
    %cst_42 = arith.constant 1.000000e+00 : f32
    %204 = vector.broadcast %cst_42 : f32 to vector<8x128xf32>
    %205 = arith.addf %204, %203 : vector<8x128xf32>
    %206 = arith.divf %204, %205 : vector<8x128xf32>
    %207 = vector.extract_strided_slice %201 {offsets = [0, 64], sizes = [8, 32], strides = [1, 1]} : vector<8x128xf32> to vector<8x32xf32>
    %208 = math.tanh %207 : vector<8x32xf32>
    %209 = vector.extract_strided_slice %206 {offsets = [0, 0], sizes = [8, 32], strides = [1, 1]} : vector<8x128xf32> to vector<8x32xf32>
    %210 = vector.extract_strided_slice %206 {offsets = [0, 32], sizes = [8, 32], strides = [1, 1]} : vector<8x128xf32> to vector<8x32xf32>
    %211 = vector.extract_strided_slice %206 {offsets = [0, 96], sizes = [8, 32], strides = [1, 1]} : vector<8x128xf32> to vector<8x32xf32>
    %212 = arith.mulf %210, %177 : vector<8x32xf32>
    %213 = arith.mulf %209, %208 : vector<8x32xf32>
    %214 = arith.addf %212, %213 : vector<8x32xf32>
    %215 = math.tanh %214 : vector<8x32xf32>
    %216 = arith.mulf %211, %215 : vector<8x32xf32>
    %cst_43 = arith.constant dense<0.000000e+00> : vector<8x128xf32>
    %217 = tpu.matmul %216, %0, %cst_43 {dimension_numbers = #tpu.dot_dimension_numbers<[1], [0], [0], [1], [0, 0, 1, 1], [], []>} : vector<8x32xf32>, vector<32x128xf32>, vector<8x128xf32> -> vector<8x128xf32>
    %cst_44 = arith.constant dense<0.000000e+00> : vector<8x128xf32>
    %218 = tpu.matmul %216, %1, %cst_44 {dimension_numbers = #tpu.dot_dimension_numbers<[1], [0], [0], [1], [0, 0, 1, 1], [], []>} : vector<8x32xf32>, vector<32x128xf32>, vector<8x128xf32> -> vector<8x128xf32>
    %219 = arith.addf %199, %218 : vector<8x128xf32>
    %220 = arith.addf %219, %5 : vector<8x128xf32>
    %221 = arith.negf %220 : vector<8x128xf32>
    %222 = math.exp %221 : vector<8x128xf32>
    %cst_45 = arith.constant 1.000000e+00 : f32
    %223 = vector.broadcast %cst_45 : f32 to vector<8x128xf32>
    %224 = arith.addf %223, %222 : vector<8x128xf32>
    %225 = arith.divf %223, %224 : vector<8x128xf32>
    %226 = vector.extract_strided_slice %220 {offsets = [0, 64], sizes = [8, 32], strides = [1, 1]} : vector<8x128xf32> to vector<8x32xf32>
    %227 = math.tanh %226 : vector<8x32xf32>
    %228 = vector.extract_strided_slice %225 {offsets = [0, 0], sizes = [8, 32], strides = [1, 1]} : vector<8x128xf32> to vector<8x32xf32>
    %229 = vector.extract_strided_slice %225 {offsets = [0, 32], sizes = [8, 32], strides = [1, 1]} : vector<8x128xf32> to vector<8x32xf32>
    %230 = vector.extract_strided_slice %225 {offsets = [0, 96], sizes = [8, 32], strides = [1, 1]} : vector<8x128xf32> to vector<8x32xf32>
    %231 = arith.mulf %229, %196 : vector<8x32xf32>
    %232 = arith.mulf %228, %227 : vector<8x32xf32>
    %233 = arith.addf %231, %232 : vector<8x32xf32>
    %234 = math.tanh %233 : vector<8x32xf32>
    %235 = arith.mulf %230, %234 : vector<8x32xf32>
    %cst_46 = arith.constant dense<0.000000e+00> : vector<8x128xf32>
    %236 = tpu.matmul %235, %2, %cst_46 {dimension_numbers = #tpu.dot_dimension_numbers<[1], [0], [0], [1], [0, 0, 1, 1], [], []>} : vector<8x32xf32>, vector<32x128xf32>, vector<8x128xf32> -> vector<8x128xf32>
    %237 = vector.extract_strided_slice %12 {offsets = [48, 0], sizes = [8, 128], strides = [1, 1]} : vector<64x128xf32> to vector<8x128xf32>
    %238 = arith.addf %237, %217 : vector<8x128xf32>
    %239 = arith.negf %238 : vector<8x128xf32>
    %240 = math.exp %239 : vector<8x128xf32>
    %cst_47 = arith.constant 1.000000e+00 : f32
    %241 = vector.broadcast %cst_47 : f32 to vector<8x128xf32>
    %242 = arith.addf %241, %240 : vector<8x128xf32>
    %243 = arith.divf %241, %242 : vector<8x128xf32>
    %244 = vector.extract_strided_slice %238 {offsets = [0, 64], sizes = [8, 32], strides = [1, 1]} : vector<8x128xf32> to vector<8x32xf32>
    %245 = math.tanh %244 : vector<8x32xf32>
    %246 = vector.extract_strided_slice %243 {offsets = [0, 0], sizes = [8, 32], strides = [1, 1]} : vector<8x128xf32> to vector<8x32xf32>
    %247 = vector.extract_strided_slice %243 {offsets = [0, 32], sizes = [8, 32], strides = [1, 1]} : vector<8x128xf32> to vector<8x32xf32>
    %248 = vector.extract_strided_slice %243 {offsets = [0, 96], sizes = [8, 32], strides = [1, 1]} : vector<8x128xf32> to vector<8x32xf32>
    %249 = arith.mulf %247, %214 : vector<8x32xf32>
    %250 = arith.mulf %246, %245 : vector<8x32xf32>
    %251 = arith.addf %249, %250 : vector<8x32xf32>
    %252 = math.tanh %251 : vector<8x32xf32>
    %253 = arith.mulf %248, %252 : vector<8x32xf32>
    %cst_48 = arith.constant dense<0.000000e+00> : vector<8x128xf32>
    %254 = tpu.matmul %253, %0, %cst_48 {dimension_numbers = #tpu.dot_dimension_numbers<[1], [0], [0], [1], [0, 0, 1, 1], [], []>} : vector<8x32xf32>, vector<32x128xf32>, vector<8x128xf32> -> vector<8x128xf32>
    %cst_49 = arith.constant dense<0.000000e+00> : vector<8x128xf32>
    %255 = tpu.matmul %253, %1, %cst_49 {dimension_numbers = #tpu.dot_dimension_numbers<[1], [0], [0], [1], [0, 0, 1, 1], [], []>} : vector<8x32xf32>, vector<32x128xf32>, vector<8x128xf32> -> vector<8x128xf32>
    %256 = arith.addf %236, %255 : vector<8x128xf32>
    %257 = arith.addf %256, %5 : vector<8x128xf32>
    %258 = arith.negf %257 : vector<8x128xf32>
    %259 = math.exp %258 : vector<8x128xf32>
    %cst_50 = arith.constant 1.000000e+00 : f32
    %260 = vector.broadcast %cst_50 : f32 to vector<8x128xf32>
    %261 = arith.addf %260, %259 : vector<8x128xf32>
    %262 = arith.divf %260, %261 : vector<8x128xf32>
    %263 = vector.extract_strided_slice %257 {offsets = [0, 64], sizes = [8, 32], strides = [1, 1]} : vector<8x128xf32> to vector<8x32xf32>
    %264 = math.tanh %263 : vector<8x32xf32>
    %265 = vector.extract_strided_slice %262 {offsets = [0, 0], sizes = [8, 32], strides = [1, 1]} : vector<8x128xf32> to vector<8x32xf32>
    %266 = vector.extract_strided_slice %262 {offsets = [0, 32], sizes = [8, 32], strides = [1, 1]} : vector<8x128xf32> to vector<8x32xf32>
    %267 = vector.extract_strided_slice %262 {offsets = [0, 96], sizes = [8, 32], strides = [1, 1]} : vector<8x128xf32> to vector<8x32xf32>
    %268 = arith.mulf %266, %233 : vector<8x32xf32>
    %269 = arith.mulf %265, %264 : vector<8x32xf32>
    %270 = arith.addf %268, %269 : vector<8x32xf32>
    %271 = math.tanh %270 : vector<8x32xf32>
    %272 = arith.mulf %267, %271 : vector<8x32xf32>
    %cst_51 = arith.constant dense<0.000000e+00> : vector<8x128xf32>
    %273 = tpu.matmul %272, %2, %cst_51 {dimension_numbers = #tpu.dot_dimension_numbers<[1], [0], [0], [1], [0, 0, 1, 1], [], []>} : vector<8x32xf32>, vector<32x128xf32>, vector<8x128xf32> -> vector<8x128xf32>
    %274 = vector.extract_strided_slice %12 {offsets = [56, 0], sizes = [8, 128], strides = [1, 1]} : vector<64x128xf32> to vector<8x128xf32>
    %275 = arith.addf %274, %254 : vector<8x128xf32>
    %276 = arith.negf %275 : vector<8x128xf32>
    %277 = math.exp %276 : vector<8x128xf32>
    %cst_52 = arith.constant 1.000000e+00 : f32
    %278 = vector.broadcast %cst_52 : f32 to vector<8x128xf32>
    %279 = arith.addf %278, %277 : vector<8x128xf32>
    %280 = arith.divf %278, %279 : vector<8x128xf32>
    %281 = vector.extract_strided_slice %275 {offsets = [0, 64], sizes = [8, 32], strides = [1, 1]} : vector<8x128xf32> to vector<8x32xf32>
    %282 = math.tanh %281 : vector<8x32xf32>
    %283 = vector.extract_strided_slice %280 {offsets = [0, 0], sizes = [8, 32], strides = [1, 1]} : vector<8x128xf32> to vector<8x32xf32>
    %284 = vector.extract_strided_slice %280 {offsets = [0, 32], sizes = [8, 32], strides = [1, 1]} : vector<8x128xf32> to vector<8x32xf32>
    %285 = vector.extract_strided_slice %280 {offsets = [0, 96], sizes = [8, 32], strides = [1, 1]} : vector<8x128xf32> to vector<8x32xf32>
    %286 = arith.mulf %284, %251 : vector<8x32xf32>
    %287 = arith.mulf %283, %282 : vector<8x32xf32>
    %288 = arith.addf %286, %287 : vector<8x32xf32>
    %289 = math.tanh %288 : vector<8x32xf32>
    %290 = arith.mulf %285, %289 : vector<8x32xf32>
    %cst_53 = arith.constant dense<0.000000e+00> : vector<8x128xf32>
    %291 = tpu.matmul %290, %1, %cst_53 {dimension_numbers = #tpu.dot_dimension_numbers<[1], [0], [0], [1], [0, 0, 1, 1], [], []>} : vector<8x32xf32>, vector<32x128xf32>, vector<8x128xf32> -> vector<8x128xf32>
    %292 = arith.addf %273, %291 : vector<8x128xf32>
    %293 = arith.addf %292, %5 : vector<8x128xf32>
    %294 = arith.negf %293 : vector<8x128xf32>
    %295 = math.exp %294 : vector<8x128xf32>
    %cst_54 = arith.constant 1.000000e+00 : f32
    %296 = vector.broadcast %cst_54 : f32 to vector<8x128xf32>
    %297 = arith.addf %296, %295 : vector<8x128xf32>
    %298 = arith.divf %296, %297 : vector<8x128xf32>
    %299 = vector.extract_strided_slice %293 {offsets = [0, 64], sizes = [8, 32], strides = [1, 1]} : vector<8x128xf32> to vector<8x32xf32>
    %300 = math.tanh %299 : vector<8x32xf32>
    %301 = vector.extract_strided_slice %298 {offsets = [0, 0], sizes = [8, 32], strides = [1, 1]} : vector<8x128xf32> to vector<8x32xf32>
    %302 = vector.extract_strided_slice %298 {offsets = [0, 32], sizes = [8, 32], strides = [1, 1]} : vector<8x128xf32> to vector<8x32xf32>
    %303 = vector.extract_strided_slice %298 {offsets = [0, 96], sizes = [8, 32], strides = [1, 1]} : vector<8x128xf32> to vector<8x32xf32>
    %304 = arith.mulf %302, %270 : vector<8x32xf32>
    %305 = arith.mulf %301, %300 : vector<8x32xf32>
    %306 = arith.addf %304, %305 : vector<8x32xf32>
    %307 = math.tanh %306 : vector<8x32xf32>
    %308 = arith.mulf %303, %307 : vector<8x32xf32>
    %309 = vector.broadcast %6 : vector<1x32xf32> to vector<8x32xf32>
    %310 = arith.mulf %308, %309 : vector<8x32xf32>
    %cst_55 = arith.constant dense<0.000000e+00> : vector<8xf32>
    %311 = vector.multi_reduction <add>, %310, %cst_55 [1] : vector<8x32xf32> to vector<8xf32>
    %312 = vector.shape_cast %311 : vector<8xf32> to vector<8x1xf32>
    %c0_56 = arith.constant 0 : index
    %c0_57 = arith.constant 0 : index
    %313 = vector.load %arg8[%c0_56, %c0_57] : memref<1x1xf32, #tpu.memory_space<vmem>>, vector<1x1xf32>
    %314 = vector.broadcast %313 : vector<1x1xf32> to vector<8x1xf32>
    %315 = arith.addf %312, %314 : vector<8x1xf32>
    %316 = vector.shape_cast %315 : vector<8x1xf32> to vector<8x1xf32>
    %317 = vector.broadcast %316 : vector<8x1xf32> to vector<8x128xf32>
    %c0_58 = arith.constant 0 : index
    %c0_59 = arith.constant 0 : index
    %318 = vector.load %arg9[%c0_58, %c0_59] : memref<8x128xf32, #tpu.memory_space<vmem>>, vector<8x128xf32>
    tpu.vector_store %arg9[%c0_58, %c0_59], %317 {strides = array<i32>} : memref<8x128xf32, #tpu.memory_space<vmem>>, vector<8x128xf32>,
    return
  }
}

</mosaic_0001>

<bundles_post_ra>
// kernel: tpu_custom_call.1
= control target key start
LH: loop header
LB: loop body
LE: loop exit
PB: predicated region body
PF: predicated region fallthrough
CT: control target
= control target key end

     0   :  { %s3517_s0 = inlined_call_operand.vmem [shape: f32[64,16], index: 0, kind: input, shape index: {}]   ;;  %s3518_s1 = inlined_call_operand.hbm [shape: f32[16,128], index: 1, kind: input, shape index: {}]   ;;  %s3519_s2 = inlined_call_operand.vmem [shape: f32[32,128], index: 2, kind: input, shape index: {}]   ;;  %s3520_s3 = inlined_call_operand.vmem [shape: f32[1,128], index: 3, kind: input, shape index: {}]   ;;  %s3521_s4 = inlined_call_operand.vmem [shape: f32[32,128], index: 4, kind: input, shape index: {}]   ;;  %s3522_s5 = inlined_call_operand.vmem [shape: f32[32,128], index: 5, kind: input, shape index: {}]   ;;  %s3523_s6 = inlined_call_operand.vmem [shape: f32[1,128], index: 6, kind: input, shape index: {}]   ;;  %s3524_s7 = inlined_call_operand.vmem [shape: f32[1,32], index: 7, kind: input, shape index: {}]   ;;  %s3525_s8 = inlined_call_operand.<no memory space> [shape: f32[1,1], index: 8, kind: input, shape index: {}]   ;;  %s3526_s9 = inlined_call_operand.hbm [shape: f32[8,128], index: 9, kind: output, shape index: {}]  }
   0x1   :  { %v14_v0 = vstv %s3525_s8 }
   0x2   :  { %15 = vst [vmem:[#allocation2] sm:$0x1] %v14_v0 }
   0x3   :  { %16 = vsyncpa [#allocation4], 0 }
   0x4   :  { %17 = vsyncpa [#allocation5], 0  ;;  %s3029_s11 = smov [#allocation3]   ;;  %s2981_s15 = scalar_lea.hbm %s3518_s1, 256 }
   0x5   :  { %s25_s12 = sshll.u32 %s3029_s11, 4  ;;  %p2982_p0 = scmp.ne.s32.totalorder %s3518_s1, %s2981_s15  ;;  %s26_s12 = int_to_ptr.vmem [resolvable:$true] %s25_s12 }
   0x6   :  { %p2985_p1 = scmp.lt.u32.totalorder %s2981_s15, %s3518_s1 }
   0x8   :  { %p2987_p2 = pnand %p2985_p1, %p2982_p0 }
   0xa   :  { %2990 = shalt.err (!%p2987_p2)
}
   0xb   :  { %s2991_s8 = scalar_lea.vmem %s26_s12, 256  ;;  %p2996_p4 = scmp.lt.s32.totalorder %s26_s12, %s26_s12 }
   0xc   :  { %p2992_p3 = scmp.ne.s32.totalorder %s26_s12, %s2991_s8  ;;  %p2997_p5 = scmp.lt.s32.totalorder %s2991_s8, %s2991_s8 }
   0xe   :  { %p2998_p6 = por %p2997_p5, %p2996_p4 }
  0x10   :  { %p2999_p7 = pnand %p2998_p6, %p2992_p3 }
  0x12   :  { %3002 = shalt.err (!%p2999_p7)
}
  0x13   :  { %s3030_s20 = smov 128   ;;  %s3031_s21 = smov 8  }
  0x14   :  { %31 = dma.hbm_to_vmem [thread:$0]  %s3518_s1, 256, %s26_s12, [#allocation4], %s3030_s20, %s3030_s20, %s3031_s21  }
  0x15   :  { %3025 = dma.done.wait [#allocation4], 256  }
  0x16   :  { %3026 = vsyncadd [#allocation4], 4294967040  ;;  %vm86_vm0 = vcmask 130048   ;;  %v77_v1 = vld [vmem:[#allocation3] sm:$0xff]  ;;  %v78_v2 = vld [vmem:[#allocation3 + $0x8] sm:$0xff]  ;;  %s3032_s29 = smov 64  }
  0x17   :  { %v69_v3 = vld [vmem:[%s3517_s0] sm:$0xff]  ;;  %v2704_v4 = vpack.c.bf16 %v78_v2, %v77_v1  ;;  %v70_v5 = vld [vmem:[%s3517_s0 + $0x8] sm:$0xff]  ;;  %s3033_s30 = smov 32   ;;  %v51_v22 = vld [vmem:[%s3519_s2 + $0x10] sm:$0xff]  ;;  %v3034_v23 = vmov 0.0|0.0   ;;  %vm3035_vm1 = vmmov 0  }
  0x18   :  { %2450 = vmatprep.mubr.msk.f32.mxu0 %vm86_vm0, %v69_v3  ;;  %v3116_v6 = vld [vmem:[%s3520_s3] ss:$0 sm:$0xff]  ;;  %v50_v21 = vld [vmem:[%s3519_s2 + $0x8] sm:$0xff]  ;;  %2708 = vmatprep.subr.bf16.mxu1 %v3034_v23  ;;  %v52_v25 = vld [vmem:[%s3519_s2 + $0x18] sm:$0xff]  ;;  %v3036_v26 = vmov 0.0   ;;  %vm244_vm2 = vcmask 261120  }
  0x19   :  { %2705 = vmatprep.subr.bf16.mxu0 %v2704_v4  ;;  %v49_v20 = vld [vmem:[%s3519_s2] sm:$0xff]  ;;  %2470 = vmatprep.mubr.msk.f32.mxu1 %vm3035_vm1, %v3036_v26  ;;  %v3145_v27 = vpack.c.bf16 %v52_v25, %v51_v22  ;;  %v54_v32 = vld [vmem:[%s3521_s4 + $0x8] sm:$0xff]  ;;  %v55_v34 = vld [vmem:[%s3521_s4 + $0x10] sm:$0xff]  ;;  %s3037_s23 = smov 96  }
  0x1a   :  { %2707 = vmatpush3.bf16.msra.mxu0 %v2704_v4  ;;  %v3136_v24 = vpack.c.bf16 %v50_v21, %v49_v20  ;;  %v53_v31 = vld [vmem:[%s3521_s4] sm:$0xff]  ;;  %v56_v35 = vld [vmem:[%s3521_s4 + $0x18] sm:$0xff]  ;;  %v71_v2 = vld [vmem:[%s3517_s0 + $0x10] sm:$0xff] }
  0x1b   :  { %2720 = vmatprep.subr.bf16.mxu0 %v3034_v23  ;;  %v3162_v33 = vpack.c.bf16 %v54_v32, %v53_v31  ;;  %v3172_v37 = vpack.c.bf16 %v56_v35, %v55_v34  ;;  %v3191_v42 = vld [vmem:[%s3523_s6] ss:$0 sm:$0xff]  ;;  %v72_v3 = vld [vmem:[%s3517_s0 + $0x18] sm:$0xff]  ;;  %v58_v22 = vld [vmem:[%s3522_s5 + $0x8] sm:$0xff] }
  0x1c   :  { %2710 = vmatpush3.bf16.msra.mxu1 %v3136_v24  ;;  %v73_v4 = vld [vmem:[%s3517_s0 + $0x20] sm:$0xff] }
  0x1d   :  { %2451 = vmatmul.mubr.msk.f32.vlgmr.msra.gmra.mrb[0].mxu0 %vm86_vm0, %v70_v5  ;;  %2711 = vmatprep.subr.bf16.mxu1 %v3034_v23  ;;  %v57_v21 = vld [vmem:[%s3522_s5] sm:$0xff] }
  0x1e   :  { %2722 = vmatpush3.bf16.msra.mxu0 %v3136_v24  ;;  %2453 = vmatprep.mubr.msk.f32.mxu0 %vm86_vm0, %v71_v2  ;;  %v3251_v25 = vpack.c.bf16 %v58_v22, %v57_v21 }
  0x1f   :  { %2723 = vmatprep.subr.bf16.mxu0 %v3034_v23 }
  0x20   :  { %2713 = vmatpush3.bf16.msra.mxu1 %v3145_v27 }
  0x21   :  { %2714 = vmatprep.subr.bf16.mxu1 %v3034_v23  ;;  %2454 = vmatmul.mubr.msk.f32.gmra.mrb[2].mxu0 %vm86_vm0, %v72_v3 }
  0x22   :  { %2725 = vmatpush3.bf16.msra.mxu0 %v3145_v27  ;;  %2456 = vmatprep.mubr.msk.f32.mxu0 %vm86_vm0, %v73_v4 }
  0x23   :  { %2732 = vmatprep.subr.bf16.mxu0 %v3034_v23 }
  0xf0   :  { %v3118_v7 = vpop.f32.mrb[0].mxu0 }
  0xf1   :  { %v177_v8 = vpop.f32.mrb[1].mxu0  ;;  %v183_v38 = vadd.f32 %v3118_v7, %v3116_v6  ;;  %v74_v7 = vld [vmem:[%s3517_s0 + $0x28] sm:$0xff] }
  0xf2   :  { %v178_v9 = vadd.f32 %v3116_v6, %v177_v8  ;;  %v75_v8 = vld [vmem:[%s3517_s0 + $0x30] sm:$0xff]  ;;  %2457 = vmatmul.mubr.msk.f32.gmra.mrb[4].mxu0 %vm86_vm0, %v74_v7 }
  0xf3   :  { %2459 = vmatprep.mubr.msk.f32.mxu0 %vm86_vm0, %v75_v8 }
  0xf4   :  { %2852 = vtanh.f32 %v178_v9  ;;  %v2286_v11 = vmul.f32 -1.442695, %v178_v9  ;;  %v76_v9 = vld [vmem:[%s3517_s0 + $0x38] sm:$0xff] }
  0xf6   :  { %2854 = vpow2.f32 %v2286_v11  ;;  %2460 = vmatmul.mubr.msk.f32.gmra.mrb[6].mxu0 %vm86_vm0, %v76_v9 }
  0xf7   :  { %2492 = vmatprep.mubr.msk.f32.mxu0 %vm3035_vm1, %v3036_v26 }
  0xfe   :  { %v2853_v10 = vpop.eup %2852 }
  0xff   :  { %226 = vrot.lane.b32.xlu0 %v2853_v10, %s3032_s29 }
 0x100   :  { %v2855_v12 = vpop.eup %2854 }
 0x101   :  { %v220_v13 = vadd.f32 1.0, %v2855_v12 }
 0x103   :  { %2856 = vrcp.f32 %v220_v13 }
 0x10d   :  { %v2857_v14 = vpop.eup %2856 }
 0x10e   :  { %v224_v17 = vmul.f32 0.0, %v2857_v14 }
 0x171   :  { %v227_v15 = vpop.permute.xlu0 %226 }
 0x172   :  { %v229_v16 = vmul.f32 %v2857_v14, %v227_v15  ;;  %v3235_v15 = vpop.f32.mrb[2].mxu0 }
 0x174   :  { %231 = vrot.lane.b32.xlu0 %v229_v16, %s3033_s30  ;;  %v187_v16 = vpop.f32.mrb[3].mxu0 }
 0x175   :  { %v188_v34 = vadd.f32 %v3116_v6, %v187_v16 }
 0x1e6   :  { %v232_v18 = vpop.permute.xlu0 %231 }
 0x1e7   :  { %v3123_v19 = vadd.f32 %v232_v18, %v224_v17  ;;  %v3237_v17 = vpop.f32.mrb[4].mxu0 }
 0x1e8   :  { %v3239_v18 = vpop.f32.mrb[5].mxu0 }
 0x1e9   :  { %2858 = vtanh.f32 %v3123_v19 }
 0x1f3   :  { %v2859_v28 = vpop.eup %2858 }
 0x1f4   :  { %237 = vrot.lane.b32.xlu1 %v2859_v28, %s3032_s29  ;;  %v59_v28 = vld [vmem:[%s3522_s5 + $0x10] sm:$0xff] }
 0x266   :  { %v238_v29 = vpop.permute.xlu1 %237 }
 0x267   :  { %v240_v30 = vmul.f32 %v2857_v14, %v238_v29  ;;  %v60_v29 = vld [vmem:[%s3522_s5 + $0x18] sm:$0xff] }
 0x268   :  { %v3262_v31 = vpack.c.bf16 %v60_v29, %v59_v28 }
 0x269   :  { %242 = vrot.lane.b32.xlu1 %v240_v30, %s3033_s30 }
 0x2db   :  { %v243_v36 = vpop.permute.xlu1 %242 }
 0x2dc   :  { %2471 = vmatmul.mubr.msk.f32.vlgmr.msra.gmra.mrb[0].mxu1 %vm244_vm2, %v243_v36 }
 0x2dd   :  { %2716 = vmatpush3.bf16.msra.mxu1 %v3162_v33  ;;  %2481 = vmatprep.mubr.msk.f32.mxu1 %vm3035_vm1, %v3036_v26 }
 0x2de   :  { %2717 = vmatprep.subr.bf16.mxu1 %v3034_v23 }
 0x2e1   :  { %2719 = vmatpush3.bf16.msra.mxu1 %v3172_v37 }
 0x2e2   :  { %2726 = vmatprep.subr.bf16.mxu1 %v3034_v23 }
 0x2e4   :  { %2482 = vmatmul.mubr.msk.f32.vlgmr.msra.gmra.mrb[2].mxu1 %vm244_vm2, %v243_v36 }
 0x2e5   :  { %2728 = vmatpush3.bf16.msra.mxu1 %v3162_v33  ;;  %2503 = vmatprep.mubr.msk.f32.mxu1 %vm3035_vm1, %v3036_v26 }
 0x2e6   :  { %2729 = vmatprep.subr.bf16.mxu1 %v3034_v23 }
 0x2e9   :  { %2731 = vmatpush3.bf16.msra.mxu1 %v3172_v37 }
 0x2ea   :  { %2738 = vmatprep.subr.bf16.mxu1 %v3034_v23 }
 0x3af   :  { %v313_v39 = vpop.f32.mrb[0].mxu1 }
 0x3b0   :  { %v411_v40 = vadd.f32 %v313_v39, %v183_v38  ;;  %v2472_v41 = vpop.f32.mrb[1].mxu1 }
 0x3b2   :  { %2860 = vtanh.f32 %v411_v40  ;;  %v2290_v48 = vmul.f32 -1.442695, %v411_v40 }
 0x3b7   :  { %v383_v43 = vpop.f32.mrb[2].mxu1 }
 0x3b8   :  { %v384_v44 = vadd.f32 %v3191_v42, %v383_v43  ;;  %v2483_v45 = vpop.f32.mrb[3].mxu1 }
 0x3ba   :  { %2862 = vtanh.f32 %v384_v44  ;;  %v2289_v49 = vmul.f32 -1.442695, %v384_v44 }
 0x3bb   :  { %2864 = vpow2.f32 %v2290_v48 }
 0x3bc   :  { %v2861_v46 = vpop.eup %2860  ;;  %2866 = vpow2.f32 %v2289_v49 }
 0x3bd   :  { %421 = vrot.lane.b32.xlu0 %v2861_v46, %s3032_s29 }
 0x3c4   :  { %v2863_v47 = vpop.eup %2862 }
 0x3c5   :  { %396 = vrot.lane.b32.xlu1 %v2863_v47, %s3032_s29  ;;  %v2865_v50 = vpop.eup %2864 }
 0x3c6   :  { %v415_v51 = vadd.f32 1.0, %v2865_v50  ;;  %v2867_v52 = vpop.eup %2866 }
 0x3c7   :  { %v390_v53 = vadd.f32 1.0, %v2867_v52 }
 0x3c8   :  { %2868 = vrcp.f32 %v415_v51 }
 0x3c9   :  { %2870 = vrcp.f32 %v390_v53 }
 0x3d2   :  { %v2869_v54 = vpop.eup %2868 }
 0x3d3   :  { %v2871_v57 = vpop.eup %2870  ;;  %v419_v60 = vmul.f32 %v2869_v54, %v3123_v19  ;;  %v3241_v19 = vpop.f32.mrb[6].mxu0 }
 0x3d4   :  { %v394_v63 = vmul.f32 0.0, %v2871_v57  ;;  %v3243_v20 = vpop.f32.mrb[7].mxu0 }
 0x42f   :  { %v422_v55 = vpop.permute.xlu0 %421 }
 0x430   :  { %v424_v56 = vmul.f32 %v2869_v54, %v422_v55 }
 0x432   :  { %426 = vrot.lane.b32.xlu0 %v424_v56, %s3033_s30 }
 0x437   :  { %v397_v58 = vpop.permute.xlu1 %396 }
 0x438   :  { %v399_v59 = vmul.f32 %v2871_v57, %v397_v58 }
 0x43a   :  { %401 = vrot.lane.b32.xlu1 %v399_v59, %s3033_s30 }
 0x4a4   :  { %v427_v61 = vpop.permute.xlu0 %426 }
 0x4a5   :  { %v3199_v62 = vadd.f32 %v427_v61, %v419_v60 }
 0x4a7   :  { %2872 = vtanh.f32 %v3199_v62 }
 0x4ac   :  { %v402_v0 = vpop.permute.xlu1 %401 }
 0x4ad   :  { %v3202_v1 = vadd.f32 %v402_v0, %v394_v63 }
 0x4af   :  { %2874 = vtanh.f32 %v3202_v1 }
 0x4b1   :  { %v2873_v5 = vpop.eup %2872 }
 0x4b2   :  { %432 = vrot.lane.b32.xlu0 %v2873_v5, %s3032_s29 }
 0x4b9   :  { %v2875_v10 = vpop.eup %2874 }
 0x4ba   :  { %407 = vrot.lane.b32.xlu1 %v2875_v10, %s3032_s29 }
 0x524   :  { %v433_v11 = vpop.permute.xlu0 %432 }
 0x525   :  { %v435_v12 = vmul.f32 %v2869_v54, %v433_v11  ;;  %v193_v11 = vadd.f32 %v3235_v15, %v3116_v6 }
 0x527   :  { %437 = vrot.lane.b32.xlu0 %v435_v12, %s3033_s30 }
 0x52c   :  { %v408_v13 = vpop.permute.xlu1 %407 }
 0x52d   :  { %v410_v14 = vmul.f32 %v2871_v57, %v408_v13 }
 0x52f   :  { %582 = vrot.lane.b32.xlu1 %v410_v14, %s3033_s30 }
 0x599   :  { %v438_v30 = vpop.permute.xlu0 %437 }
 0x59a   :  { %2493 = vmatmul.mubr.msk.f32.vlgmr.msra.gmra.mrb[8].mxu0 %vm244_vm2, %v438_v30  ;;  %2504 = vmatmul.mubr.msk.f32.vlgmr.msra.gmra.mrb[4].mxu1 %vm244_vm2, %v438_v30 }
 0x59b   :  { %2734 = vmatpush3.bf16.msra.mxu0 %v3251_v25  ;;  %2514 = vmatprep.mubr.msk.f32.mxu0 %vm3035_vm1, %v3036_v26 }
 0x59c   :  { %2735 = vmatprep.subr.bf16.mxu0 %v3034_v23  ;;  %2740 = vmatpush3.bf16.msra.mxu1 %v3136_v24 }
 0x59d   :  { %2741 = vmatprep.subr.bf16.mxu1 %v3034_v23  ;;  %2525 = vmatprep.mubr.msk.f32.mxu1 %vm3035_vm1, %v3036_v26 }
 0x59f   :  { %2737 = vmatpush3.bf16.msra.mxu0 %v3262_v31 }
 0x5a0   :  { %2744 = vmatprep.subr.bf16.mxu0 %v3034_v23  ;;  %2743 = vmatpush3.bf16.msra.mxu1 %v3145_v27 }
 0x5a1   :  { %v583_v32 = vpop.permute.xlu1 %582  ;;  %2750 = vmatprep.subr.bf16.mxu1 %v3034_v23 }
 0x5a2   :  { %2515 = vmatmul.mubr.msk.f32.vlgmr.msra.gmra.mrb[10].mxu0 %vm244_vm2, %v583_v32 }
 0x5a3   :  { %2746 = vmatpush3.bf16.msra.mxu0 %v3162_v33  ;;  %2536 = vmatprep.mubr.msk.f32.mxu0 %vm3035_vm1, %v3036_v26 }
 0x5a4   :  { %2747 = vmatprep.subr.bf16.mxu0 %v3034_v23 }
 0x5a7   :  { %2749 = vmatpush3.bf16.msra.mxu0 %v3172_v37 }
 0x5a8   :  { %2756 = vmatprep.subr.bf16.mxu0 %v3034_v23 }
 0x66d   :  { %v507_v35 = vpop.f32.mrb[8].mxu0  ;;  %v577_v36 = vpop.f32.mrb[4].mxu1 }
 0x66e   :  { %v681_v38 = vadd.f32 %v507_v35, %v188_v34  ;;  %v2494_v39 = vpop.f32.mrb[9].mxu0  ;;  %v2505_v40 = vpop.f32.mrb[5].mxu1 }
 0x670   :  { %2876 = vtanh.f32 %v681_v38  ;;  %v2295_v48 = vmul.f32 -1.442695, %v681_v38 }
 0x675   :  { %v652_v41 = vpop.f32.mrb[10].mxu0 }
 0x676   :  { %v653_v43 = vadd.f32 %v652_v41, %v577_v36  ;;  %v2516_v44 = vpop.f32.mrb[11].mxu0 }
 0x678   :  { %v656_v45 = vadd.f32 %v3191_v42, %v653_v43 }
 0x67a   :  { %v2877_v46 = vpop.eup %2876  ;;  %2878 = vtanh.f32 %v656_v45  ;;  %v2294_v49 = vmul.f32 -1.442695, %v656_v45 }
 0x67b   :  { %691 = vrot.lane.b32.xlu0 %v2877_v46, %s3032_s29  ;;  %2880 = vpow2.f32 %v2295_v48 }
 0x67c   :  { %2882 = vpow2.f32 %v2294_v49 }
 0x684   :  { %v2879_v47 = vpop.eup %2878 }
 0x685   :  { %666 = vrot.lane.b32.xlu1 %v2879_v47, %s3032_s29  ;;  %v2881_v50 = vpop.eup %2880 }
 0x686   :  { %v685_v51 = vadd.f32 1.0, %v2881_v50  ;;  %v2883_v52 = vpop.eup %2882 }
 0x687   :  { %v660_v53 = vadd.f32 1.0, %v2883_v52 }
 0x688   :  { %2884 = vrcp.f32 %v685_v51 }
 0x689   :  { %2886 = vrcp.f32 %v660_v53 }
 0x692   :  { %v2885_v54 = vpop.eup %2884 }
 0x693   :  { %v2887_v57 = vpop.eup %2886  ;;  %v689_v60 = vmul.f32 %v2885_v54, %v3199_v62 }
 0x694   :  { %v664_v0 = vmul.f32 %v2887_v57, %v3202_v1 }
 0x6ed   :  { %v692_v55 = vpop.permute.xlu0 %691 }
 0x6ee   :  { %v694_v56 = vmul.f32 %v2885_v54, %v692_v55 }
 0x6f0   :  { %696 = vrot.lane.b32.xlu0 %v694_v56, %s3033_s30 }
 0x6f7   :  { %v667_v58 = vpop.permute.xlu1 %666 }
 0x6f8   :  { %v669_v59 = vmul.f32 %v2887_v57, %v667_v58 }
 0x6fa   :  { %671 = vrot.lane.b32.xlu1 %v669_v59, %s3033_s30 }
 0x762   :  { %v697_v61 = vpop.permute.xlu0 %696 }
 0x763   :  { %v3289_v63 = vadd.f32 %v697_v61, %v689_v60 }
 0x765   :  { %2888 = vtanh.f32 %v3289_v63 }
 0x76c   :  { %v672_v2 = vpop.permute.xlu1 %671 }
 0x76d   :  { %v3293_v3 = vadd.f32 %v672_v2, %v664_v0 }
 0x76f   :  { %v2889_v4 = vpop.eup %2888  ;;  %2890 = vtanh.f32 %v3293_v3 }
 0x770   :  { %702 = vrot.lane.b32.xlu0 %v2889_v4, %s3032_s29 }
 0x779   :  { %v2891_v5 = vpop.eup %2890 }
 0x77a   :  { %677 = vrot.lane.b32.xlu1 %v2891_v5, %s3032_s29 }
 0x7e2   :  { %v703_v7 = vpop.permute.xlu0 %702 }
 0x7e3   :  { %v705_v62 = vmul.f32 %v2885_v54, %v703_v7 }
 0x7e5   :  { %707 = vrot.lane.b32.xlu0 %v705_v62, %s3033_s30 }
 0x7ec   :  { %v678_v8 = vpop.permute.xlu1 %677 }
 0x7ed   :  { %v680_v9 = vmul.f32 %v2887_v57, %v678_v8 }
 0x7ef   :  { %852 = vrot.lane.b32.xlu1 %v680_v9, %s3033_s30 }
 0x857   :  { %v708_v1 = vpop.permute.xlu0 %707 }
 0x858   :  { %2526 = vmatmul.mubr.msk.f32.vlgmr.msra.gmra.mrb[6].mxu1 %vm244_vm2, %v708_v1  ;;  %2537 = vmatmul.mubr.msk.f32.vlgmr.msra.gmra.mrb[12].mxu0 %vm244_vm2, %v708_v1 }
 0x859   :  { %2752 = vmatpush3.bf16.msra.mxu1 %v3251_v25  ;;  %2547 = vmatprep.mubr.msk.f32.mxu1 %vm3035_vm1, %v3036_v26 }
 0x85a   :  { %2753 = vmatprep.subr.bf16.mxu1 %v3034_v23  ;;  %2758 = vmatpush3.bf16.msra.mxu0 %v3136_v24 }
 0x85b   :  { %2759 = vmatprep.subr.bf16.mxu0 %v3034_v23  ;;  %2558 = vmatprep.mubr.msk.f32.mxu0 %vm3035_vm1, %v3036_v26 }
 0x85d   :  { %2755 = vmatpush3.bf16.msra.mxu1 %v3262_v31 }
 0x85e   :  { %2762 = vmatprep.subr.bf16.mxu1 %v3034_v23  ;;  %2761 = vmatpush3.bf16.msra.mxu0 %v3145_v27 }
 0x85f   :  { %2768 = vmatprep.subr.bf16.mxu0 %v3034_v23 }
 0x861   :  { %v853_v10 = vpop.permute.xlu1 %852 }
 0x862   :  { %2548 = vmatmul.mubr.msk.f32.vlgmr.msra.gmra.mrb[8].mxu1 %vm244_vm2, %v853_v10 }
 0x863   :  { %2764 = vmatpush3.bf16.msra.mxu1 %v3162_v33  ;;  %2569 = vmatprep.mubr.msk.f32.mxu1 %vm3035_vm1, %v3036_v26 }
 0x864   :  { %2765 = vmatprep.subr.bf16.mxu1 %v3034_v23 }
 0x867   :  { %2767 = vmatpush3.bf16.msra.mxu1 %v3172_v37 }
 0x868   :  { %2774 = vmatprep.subr.bf16.mxu1 %v3034_v23 }
 0x92b   :  { %v777_v12 = vpop.f32.mrb[6].mxu1  ;;  %v847_v13 = vpop.f32.mrb[12].mxu0 }
 0x92c   :  { %v951_v14 = vadd.f32 %v777_v12, %v193_v11  ;;  %v2527_v16 = vpop.f32.mrb[7].mxu1  ;;  %v2538_v21 = vpop.f32.mrb[13].mxu0 }
 0x92e   :  { %2892 = vtanh.f32 %v951_v14  ;;  %v2300_v35 = vmul.f32 -1.442695, %v951_v14 }
 0x935   :  { %v922_v22 = vpop.f32.mrb[8].mxu1 }
 0x936   :  { %v923_v28 = vadd.f32 %v922_v22, %v847_v13  ;;  %v2549_v29 = vpop.f32.mrb[9].mxu1 }
 0x938   :  { %v2893_v30 = vpop.eup %2892  ;;  %v926_v32 = vadd.f32 %v3191_v42, %v923_v28 }
 0x939   :  { %961 = vrot.lane.b32.xlu0 %v2893_v30, %s3032_s29 }
 0x93a   :  { %2894 = vtanh.f32 %v926_v32  ;;  %v2299_v15 = vmul.f32 -1.442695, %v926_v32 }
 0x93b   :  { %2896 = vpow2.f32 %v2300_v35 }
 0x93c   :  { %2898 = vpow2.f32 %v2299_v15 }
 0x944   :  { %v2895_v34 = vpop.eup %2894 }
 0x945   :  { %936 = vrot.lane.b32.xlu1 %v2895_v34, %s3032_s29  ;;  %v2897_v36 = vpop.eup %2896 }
 0x946   :  { %v955_v38 = vadd.f32 1.0, %v2897_v36  ;;  %v2899_v39 = vpop.eup %2898 }
 0x947   :  { %v930_v40 = vadd.f32 1.0, %v2899_v39 }
 0x948   :  { %2900 = vrcp.f32 %v955_v38 }
 0x949   :  { %2902 = vrcp.f32 %v930_v40 }
 0x952   :  { %v2901_v41 = vpop.eup %2900 }
 0x953   :  { %v2903_v45 = vpop.eup %2902  ;;  %v959_v48 = vmul.f32 %v2901_v41, %v3289_v63  ;;  %v198_v63 = vadd.f32 %v3116_v6, %v3239_v18 }
 0x954   :  { %v934_v51 = vmul.f32 %v2903_v45, %v3293_v3 }
 0x9ab   :  { %v962_v43 = vpop.permute.xlu0 %961 }
 0x9ac   :  { %v964_v44 = vmul.f32 %v2901_v41, %v962_v43 }
 0x9ae   :  { %966 = vrot.lane.b32.xlu0 %v964_v44, %s3033_s30 }
 0x9b7   :  { %v937_v46 = vpop.permute.xlu1 %936 }
 0x9b8   :  { %v939_v47 = vmul.f32 %v2903_v45, %v937_v46 }
 0x9ba   :  { %941 = vrot.lane.b32.xlu1 %v939_v47, %s3033_s30 }
 0xa20   :  { %v967_v49 = vpop.permute.xlu0 %966 }
 0xa21   :  { %v3329_v50 = vadd.f32 %v967_v49, %v959_v48  ;;  %v203_v49 = vadd.f32 %v3237_v17, %v3116_v6 }
 0xa23   :  { %2904 = vtanh.f32 %v3329_v50 }
 0xa2c   :  { %v942_v52 = vpop.permute.xlu1 %941 }
 0xa2d   :  { %v2905_v53 = vpop.eup %2904  ;;  %v3333_v54 = vadd.f32 %v942_v52, %v934_v51 }
 0xa2e   :  { %972 = vrot.lane.b32.xlu0 %v2905_v53, %s3032_s29 }
 0xa2f   :  { %2906 = vtanh.f32 %v3333_v54 }
 0xa39   :  { %v2907_v55 = vpop.eup %2906 }
 0xa3a   :  { %947 = vrot.lane.b32.xlu1 %v2907_v55, %s3032_s29 }
 0xaa0   :  { %v973_v56 = vpop.permute.xlu0 %972 }
 0xaa1   :  { %v975_v57 = vmul.f32 %v2901_v41, %v973_v56 }
 0xaa3   :  { %977 = vrot.lane.b32.xlu0 %v975_v57, %s3033_s30 }
 0xaac   :  { %v948_v58 = vpop.permute.xlu1 %947 }
 0xaad   :  { %v950_v59 = vmul.f32 %v2903_v45, %v948_v58 }
 0xaaf   :  { %1122 = vrot.lane.b32.xlu1 %v950_v59, %s3033_s30 }
 0xb15   :  { %v978_v60 = vpop.permute.xlu0 %977 }
 0xb16   :  { %2559 = vmatmul.mubr.msk.f32.vlgmr.msra.gmra.mrb[14].mxu0 %vm244_vm2, %v978_v60  ;;  %2570 = vmatmul.mubr.msk.f32.vlgmr.msra.gmra.mrb[10].mxu1 %vm244_vm2, %v978_v60 }
 0xb17   :  { %2770 = vmatpush3.bf16.msra.mxu0 %v3251_v25  ;;  %2580 = vmatprep.mubr.msk.f32.mxu0 %vm3035_vm1, %v3036_v26 }
 0xb18   :  { %2771 = vmatprep.subr.bf16.mxu0 %v3034_v23  ;;  %2776 = vmatpush3.bf16.msra.mxu1 %v3136_v24 }
 0xb19   :  { %2777 = vmatprep.subr.bf16.mxu1 %v3034_v23  ;;  %2591 = vmatprep.mubr.msk.f32.mxu1 %vm3035_vm1, %v3036_v26 }
 0xb1b   :  { %2773 = vmatpush3.bf16.msra.mxu0 %v3262_v31 }
 0xb1c   :  { %2780 = vmatprep.subr.bf16.mxu0 %v3034_v23  ;;  %2779 = vmatpush3.bf16.msra.mxu1 %v3145_v27 }
 0xb1d   :  { %2786 = vmatprep.subr.bf16.mxu1 %v3034_v23 }
 0xb21   :  { %v1123_v61 = vpop.permute.xlu1 %1122 }
 0xb22   :  { %2581 = vmatmul.mubr.msk.f32.vlgmr.msra.gmra.mrb[16].mxu0 %vm244_vm2, %v1123_v61 }
 0xb23   :  { %2782 = vmatpush3.bf16.msra.mxu0 %v3162_v33  ;;  %2602 = vmatprep.mubr.msk.f32.mxu0 %vm3035_vm1, %v3036_v26 }
 0xb24   :  { %2783 = vmatprep.subr.bf16.mxu0 %v3034_v23 }
 0xb27   :  { %2785 = vmatpush3.bf16.msra.mxu0 %v3172_v37 }
 0xb28   :  { %2792 = vmatprep.subr.bf16.mxu0 %v3034_v23 }
 0xbe9   :  { %v1047_v0 = vpop.f32.mrb[14].mxu0  ;;  %v1117_v2 = vpop.f32.mrb[10].mxu1 }
 0xbea   :  { %v1221_v3 = vadd.f32 %v1047_v0, %v198_v63  ;;  %v2560_v4 = vpop.f32.mrb[15].mxu0  ;;  %v2571_v5 = vpop.f32.mrb[11].mxu1 }
 0xbec   :  { %2908 = vtanh.f32 %v1221_v3  ;;  %v2305_v11 = vmul.f32 -1.442695, %v1221_v3 }
 0xbf5   :  { %v1192_v7 = vpop.f32.mrb[16].mxu0 }
 0xbf6   :  { %v2909_v62 = vpop.eup %2908  ;;  %v1193_v8 = vadd.f32 %v1192_v7, %v1117_v2  ;;  %v2582_v9 = vpop.f32.mrb[17].mxu0 }
 0xbf7   :  { %1231 = vrot.lane.b32.xlu0 %v2909_v62, %s3032_s29 }
 0xbf8   :  { %v1196_v1 = vadd.f32 %v3191_v42, %v1193_v8 }
 0xbfa   :  { %2910 = vtanh.f32 %v1196_v1  ;;  %v2304_v12 = vmul.f32 -1.442695, %v1196_v1 }
 0xbfb   :  { %2912 = vpow2.f32 %v2305_v11 }
 0xbfc   :  { %2914 = vpow2.f32 %v2304_v12 }
 0xc04   :  { %v2911_v10 = vpop.eup %2910 }
 0xc05   :  { %1206 = vrot.lane.b32.xlu1 %v2911_v10, %s3032_s29  ;;  %v2913_v18 = vpop.eup %2912 }
 0xc06   :  { %v1225_v13 = vadd.f32 1.0, %v2913_v18  ;;  %v2915_v14 = vpop.eup %2914 }
 0xc07   :  { %v1200_v21 = vadd.f32 1.0, %v2915_v14 }
 0xc08   :  { %2916 = vrcp.f32 %v1225_v13 }
 0xc09   :  { %2918 = vrcp.f32 %v1200_v21 }
 0xc12   :  { %v2917_v16 = vpop.eup %2916 }
 0xc13   :  { %v2919_v29 = vpop.eup %2918  ;;  %v1229_v34 = vmul.f32 %v2917_v16, %v3329_v50 }
 0xc14   :  { %v1204_v38 = vmul.f32 %v2919_v29, %v3333_v54 }
 0xc69   :  { %v1232_v22 = vpop.permute.xlu0 %1231 }
 0xc6a   :  { %v1234_v28 = vmul.f32 %v2917_v16, %v1232_v22 }
 0xc6c   :  { %1236 = vrot.lane.b32.xlu0 %v1234_v28, %s3033_s30 }
 0xc77   :  { %v1207_v30 = vpop.permute.xlu1 %1206 }
 0xc78   :  { %v1209_v32 = vmul.f32 %v2919_v29, %v1207_v30 }
 0xc7a   :  { %1211 = vrot.lane.b32.xlu1 %v1209_v32, %s3033_s30 }
 0xcde   :  { %v1237_v35 = vpop.permute.xlu0 %1236 }
 0xcdf   :  { %v3369_v15 = vadd.f32 %v1237_v35, %v1229_v34 }
 0xce1   :  { %2920 = vtanh.f32 %v3369_v15 }
 0xceb   :  { %v2921_v36 = vpop.eup %2920 }
 0xcec   :  { %v1212_v39 = vpop.permute.xlu1 %1211  ;;  %1242 = vrot.lane.b32.xlu0 %v2921_v36, %s3032_s29 }
 0xced   :  { %v3374_v40 = vadd.f32 %v1212_v39, %v1204_v38 }
 0xcef   :  { %2922 = vtanh.f32 %v3374_v40 }
 0xcf9   :  { %v2923_v41 = vpop.eup %2922 }
 0xcfa   :  { %1217 = vrot.lane.b32.xlu1 %v2923_v41, %s3032_s29 }
 0xd5e   :  { %v1243_v43 = vpop.permute.xlu0 %1242 }
 0xd5f   :  { %v1245_v44 = vmul.f32 %v2917_v16, %v1243_v43 }
 0xd61   :  { %1247 = vrot.lane.b32.xlu0 %v1245_v44, %s3033_s30 }
 0xd6c   :  { %v1218_v45 = vpop.permute.xlu1 %1217 }
 0xd6d   :  { %v1220_v46 = vmul.f32 %v2919_v29, %v1218_v45 }
 0xd6f   :  { %1392 = vrot.lane.b32.xlu1 %v1220_v46, %s3033_s30 }
 0xdd3   :  { %v1248_v47 = vpop.permute.xlu0 %1247 }
 0xdd4   :  { %2592 = vmatmul.mubr.msk.f32.vlgmr.msra.gmra.mrb[12].mxu1 %vm244_vm2, %v1248_v47  ;;  %2603 = vmatmul.mubr.msk.f32.vlgmr.msra.gmra.mrb[18].mxu0 %vm244_vm2, %v1248_v47 }
 0xdd5   :  { %2788 = vmatpush3.bf16.msra.mxu1 %v3251_v25  ;;  %2613 = vmatprep.mubr.msk.f32.mxu1 %vm3035_vm1, %v3036_v26 }
 0xdd6   :  { %2789 = vmatprep.subr.bf16.mxu1 %v3034_v23  ;;  %2794 = vmatpush3.bf16.msra.mxu0 %v3136_v24 }
 0xdd7   :  { %2795 = vmatprep.subr.bf16.mxu0 %v3034_v23  ;;  %2624 = vmatprep.mubr.msk.f32.mxu0 %vm3035_vm1, %v3036_v26 }
 0xdd9   :  { %2791 = vmatpush3.bf16.msra.mxu1 %v3262_v31 }
 0xdda   :  { %2798 = vmatprep.subr.bf16.mxu1 %v3034_v23  ;;  %2797 = vmatpush3.bf16.msra.mxu0 %v3145_v27 }
 0xddb   :  { %2804 = vmatprep.subr.bf16.mxu0 %v3034_v23 }
 0xde1   :  { %v1393_v48 = vpop.permute.xlu1 %1392 }
 0xde2   :  { %2614 = vmatmul.mubr.msk.f32.vlgmr.msra.gmra.mrb[14].mxu1 %vm244_vm2, %v1393_v48 }
 0xde3   :  { %2800 = vmatpush3.bf16.msra.mxu1 %v3162_v33  ;;  %2635 = vmatprep.mubr.msk.f32.mxu1 %vm3035_vm1, %v3036_v26 }
 0xde4   :  { %2801 = vmatprep.subr.bf16.mxu1 %v3034_v23 }
 0xde7   :  { %2803 = vmatpush3.bf16.msra.mxu1 %v3172_v37 }
 0xde8   :  { %2810 = vmatprep.subr.bf16.mxu1 %v3034_v23 }
 0xea7   :  { %v1317_v50 = vpop.f32.mrb[12].mxu1  ;;  %v1387_v51 = vpop.f32.mrb[18].mxu0 }
 0xea8   :  { %v1491_v52 = vadd.f32 %v1317_v50, %v203_v49  ;;  %v2593_v53 = vpop.f32.mrb[13].mxu1  ;;  %v2604_v54 = vpop.f32.mrb[19].mxu0 }
 0xeaa   :  { %2924 = vtanh.f32 %v1491_v52  ;;  %v2310_v61 = vmul.f32 -1.442695, %v1491_v52 }
 0xeb4   :  { %v2925_v55 = vpop.eup %2924 }
 0xeb5   :  { %v1462_v56 = vpop.f32.mrb[14].mxu1  ;;  %1501 = vrot.lane.b32.xlu0 %v2925_v55, %s3032_s29 }
 0xeb6   :  { %v1463_v57 = vadd.f32 %v1462_v56, %v1387_v51  ;;  %v2615_v58 = vpop.f32.mrb[15].mxu1 }
 0xeb8   :  { %v1466_v59 = vadd.f32 %v3191_v42, %v1463_v57 }
 0xeba   :  { %2926 = vtanh.f32 %v1466_v59  ;;  %v2309_v63 = vmul.f32 -1.442695, %v1466_v59 }
 0xebb   :  { %2928 = vpow2.f32 %v2310_v61 }
 0xebc   :  { %2930 = vpow2.f32 %v2309_v63 }
 0xec4   :  { %v2927_v60 = vpop.eup %2926 }
 0xec5   :  { %1476 = vrot.lane.b32.xlu1 %v2927_v60, %s3032_s29  ;;  %v2929_v17 = vpop.eup %2928 }
 0xec6   :  { %v1495_v0 = vadd.f32 1.0, %v2929_v17  ;;  %v2931_v2 = vpop.eup %2930 }
 0xec7   :  { %v1470_v7 = vadd.f32 1.0, %v2931_v2 }
 0xec8   :  { %2932 = vrcp.f32 %v1495_v0 }
 0xec9   :  { %2934 = vrcp.f32 %v1470_v7 }
 0xed2   :  { %v2933_v3 = vpop.eup %2932 }
 0xed3   :  { %v2935_v62 = vpop.eup %2934  ;;  %v1499_v1 = vmul.f32 %v2933_v3, %v3369_v15 }
 0xed4   :  { %v1474_v12 = vmul.f32 %v2935_v62, %v3374_v40 }
 0xf27   :  { %v1502_v4 = vpop.permute.xlu0 %1501 }
 0xf28   :  { %v1504_v5 = vmul.f32 %v2933_v3, %v1502_v4 }
 0xf2a   :  { %1506 = vrot.lane.b32.xlu0 %v1504_v5, %s3033_s30 }
 0xf37   :  { %v1477_v8 = vpop.permute.xlu1 %1476 }
 0xf38   :  { %v1479_v9 = vmul.f32 %v2935_v62, %v1477_v8 }
 0xf3a   :  { %1481 = vrot.lane.b32.xlu1 %v1479_v9, %s3033_s30 }
 0xf9c   :  { %v1507_v10 = vpop.permute.xlu0 %1506 }
 0xf9d   :  { %v3409_v11 = vadd.f32 %v1507_v10, %v1499_v1 }
 0xf9f   :  { %2936 = vtanh.f32 %v3409_v11 }
 0xfa9   :  { %v2937_v18 = vpop.eup %2936 }
 0xfaa   :  { %1512 = vrot.lane.b32.xlu0 %v2937_v18, %s3032_s29 }
 0xfac   :  { %v1482_v13 = vpop.permute.xlu1 %1481 }
 0xfad   :  { %v3414_v14 = vadd.f32 %v1482_v13, %v1474_v12 }
 0xfaf   :  { %2938 = vtanh.f32 %v3414_v14 }
 0xfb9   :  { %v2939_v16 = vpop.eup %2938 }
 0xfba   :  { %1487 = vrot.lane.b32.xlu1 %v2939_v16, %s3032_s29 }
0x101c   :  { %v1513_v21 = vpop.permute.xlu0 %1512 }
0x101d   :  { %v1515_v22 = vmul.f32 %v2933_v3, %v1513_v21 }
0x101f   :  { %1517 = vrot.lane.b32.xlu0 %v1515_v22, %s3033_s30 }
0x102c   :  { %v1488_v28 = vpop.permute.xlu1 %1487 }
0x102d   :  { %v1490_v29 = vmul.f32 %v2935_v62, %v1488_v28 }
0x102f   :  { %1662 = vrot.lane.b32.xlu1 %v1490_v29, %s3033_s30 }
0x1091   :  { %v1518_v30 = vpop.permute.xlu0 %1517 }
0x1092   :  { %2625 = vmatmul.mubr.msk.f32.vlgmr.msra.gmra.mrb[20].mxu0 %vm244_vm2, %v1518_v30  ;;  %2636 = vmatmul.mubr.msk.f32.vlgmr.msra.gmra.mrb[16].mxu1 %vm244_vm2, %v1518_v30 }
0x1093   :  { %2806 = vmatpush3.bf16.msra.mxu0 %v3251_v25  ;;  %2646 = vmatprep.mubr.msk.f32.mxu0 %vm3035_vm1, %v3036_v26 }
0x1094   :  { %2807 = vmatprep.subr.bf16.mxu0 %v3034_v23  ;;  %2812 = vmatpush3.bf16.msra.mxu1 %v3136_v24  ;;  %v208_v24 = vadd.f32 %v3116_v6, %v3243_v20 }
0x1095   :  { %2813 = vmatprep.subr.bf16.mxu1 %v3034_v23  ;;  %2657 = vmatprep.mubr.msk.f32.mxu1 %vm3035_vm1, %v3036_v26 }
0x1097   :  { %2809 = vmatpush3.bf16.msra.mxu0 %v3262_v31 }
0x1098   :  { %2816 = vmatprep.subr.bf16.mxu0 %v3034_v23  ;;  %2815 = vmatpush3.bf16.msra.mxu1 %v3145_v27 }
0x1099   :  { %2822 = vmatprep.subr.bf16.mxu1 %v3034_v23 }
0x10a1   :  { %v1663_v32 = vpop.permute.xlu1 %1662 }
0x10a2   :  { %2647 = vmatmul.mubr.msk.f32.vlgmr.msra.gmra.mrb[22].mxu0 %vm244_vm2, %v1663_v32 }
0x10a3   :  { %2818 = vmatpush3.bf16.msra.mxu0 %v3162_v33  ;;  %2668 = vmatprep.mubr.msk.f32.mxu0 %vm3035_vm1, %v3036_v26 }
0x10a4   :  { %2819 = vmatprep.subr.bf16.mxu0 %v3034_v23 }
0x10a7   :  { %2821 = vmatpush3.bf16.msra.mxu0 %v3172_v37 }
0x10a8   :  { %2828 = vmatprep.subr.bf16.mxu0 %v3034_v23 }
0x1165   :  { %v1587_v27 = vpop.f32.mrb[20].mxu0  ;;  %v1657_v34 = vpop.f32.mrb[16].mxu1 }
0x1166   :  { %v1761_v35 = vadd.f32 %v1587_v27, %v208_v24  ;;  %v2626_v15 = vpop.f32.mrb[21].mxu0  ;;  %v2637_v36 = vpop.f32.mrb[17].mxu1 }
0x1168   :  { %2940 = vtanh.f32 %v1761_v35  ;;  %v2315_v45 = vmul.f32 -1.442695, %v1761_v35 }
0x1172   :  { %v2941_v38 = vpop.eup %2940 }
0x1173   :  { %1771 = vrot.lane.b32.xlu0 %v2941_v38, %s3032_s29 }
0x1175   :  { %v1732_v39 = vpop.f32.mrb[22].mxu0 }
0x1176   :  { %v1733_v40 = vadd.f32 %v1732_v39, %v1657_v34  ;;  %v2648_v41 = vpop.f32.mrb[23].mxu0 }
0x1178   :  { %v1736_v43 = vadd.f32 %v3191_v42, %v1733_v40 }
0x117a   :  { %2942 = vtanh.f32 %v1736_v43  ;;  %v2314_v46 = vmul.f32 -1.442695, %v1736_v43 }
0x117b   :  { %2944 = vpow2.f32 %v2315_v45 }
0x1184   :  { %v2943_v44 = vpop.eup %2942 }
0x1185   :  { %1746 = vrot.lane.b32.xlu1 %v2943_v44, %s3032_s29  ;;  %v2945_v6 = vpop.eup %2944 }
0x1186   :  { %v1765_v20 = vadd.f32 1.0, %v2945_v6 }
0x1188   :  { %2946 = vrcp.f32 %v1765_v20 }
0x1189   :  { %2948 = vpow2.f32 %v2314_v46 }
0x1192   :  { %v2947_v47 = vpop.eup %2946 }
0x1193   :  { %v2949_v49 = vpop.eup %2948  ;;  %v1769_v55 = vmul.f32 %v2947_v47, %v3409_v11 }
0x1194   :  { %v1740_v51 = vadd.f32 1.0, %v2949_v49 }
0x1196   :  { %2950 = vrcp.f32 %v1740_v51 }
0x11a0   :  { %v2951_v52 = vpop.eup %2950 }
0x11a1   :  { %v1744_v59 = vmul.f32 %v2951_v52, %v3414_v14 }
0x11e5   :  { %v1772_v48 = vpop.permute.xlu0 %1771 }
0x11e6   :  { %v1774_v50 = vmul.f32 %v2947_v47, %v1772_v48 }
0x11e8   :  { %1776 = vrot.lane.b32.xlu0 %v1774_v50, %s3033_s30 }
0x11f7   :  { %v1747_v53 = vpop.permute.xlu1 %1746 }
0x11f8   :  { %v1749_v54 = vmul.f32 %v2951_v52, %v1747_v53 }
0x11fa   :  { %1751 = vrot.lane.b32.xlu1 %v1749_v54, %s3033_s30 }
0x125a   :  { %v1777_v56 = vpop.permute.xlu0 %1776 }
0x125b   :  { %v3449_v57 = vadd.f32 %v1777_v56, %v1769_v55 }
0x125d   :  { %2952 = vtanh.f32 %v3449_v57 }
0x1267   :  { %v2953_v58 = vpop.eup %2952 }
0x1268   :  { %1782 = vrot.lane.b32.xlu0 %v2953_v58, %s3032_s29  ;;  %v2324_v58 = vld [vmem:[%s3524_s7] ss:$0 sm:$0xff]  ;;  %s3039_s7 = smov [#allocation6]  }
0x1269   :  { %s2267_s4 = sshll.u32 %s3039_s7, 4  ;;  %s2268_s4 = int_to_ptr.vmem [resolvable:$true] %s2267_s4 }
0x126a   :  { %p3008_p9 = scmp.lt.s32.totalorder %s2268_s4, %s2268_s4 }
0x126c   :  { %v1752_v60 = vpop.permute.xlu1 %1751 }
0x126d   :  { %v3454_v61 = vadd.f32 %v1752_v60, %v1744_v59 }
0x126f   :  { %2954 = vtanh.f32 %v3454_v61 }
0x1279   :  { %v2955_v17 = vpop.eup %2954 }
0x127a   :  { %1757 = vrot.lane.b32.xlu1 %v2955_v17, %s3032_s29 }
0x12da   :  { %v1783_v63 = vpop.permute.xlu0 %1782 }
0x12db   :  { %v1785_v0 = vmul.f32 %v2947_v47, %v1783_v63 }
0x12dd   :  { %1787 = vrot.lane.b32.xlu0 %v1785_v0, %s3033_s30 }
0x12ec   :  { %v1758_v2 = vpop.permute.xlu1 %1757 }
0x12ed   :  { %v1760_v3 = vmul.f32 %v2951_v52, %v1758_v2 }
0x12ef   :  { %1932 = vrot.lane.b32.xlu1 %v1760_v3, %s3033_s30 }
0x134f   :  { %v1788_v4 = vpop.permute.xlu0 %1787 }
0x1350   :  { %2658 = vmatmul.mubr.msk.f32.vlgmr.msra.gmra.mrb[18].mxu1 %vm244_vm2, %v1788_v4  ;;  %2669 = vmatmul.mubr.msk.f32.vlgmr.msra.gmra.mrb[24].mxu0 %vm244_vm2, %v1788_v4 }
0x1351   :  { %2824 = vmatpush3.bf16.msra.mxu1 %v3251_v25  ;;  %2679 = vmatprep.mubr.msk.f32.mxu1 %vm3035_vm1, %v3036_v26 }
0x1352   :  { %2825 = vmatprep.subr.bf16.mxu1 %v3034_v23  ;;  %2830 = vmatpush3.bf16.msra.mxu0 %v3162_v33  ;;  %v2980_v33 = vld [vmem:[%s3520_s3] ss:$0 sm:$0xff] }
0x1353   :  { %2831 = vmatprep.subr.bf16.mxu0 %v3034_v23  ;;  %2690 = vmatprep.mubr.msk.f32.mxu0 %vm3035_vm1, %v3036_v26 }
0x1355   :  { %2827 = vmatpush3.bf16.msra.mxu1 %v3262_v31 }
0x1356   :  { %2833 = vmatpush3.bf16.msra.mxu0 %v3172_v37  ;;  %2834 = vmatprep.subr.bf16.mxu1 %v3034_v23  ;;  %v213_v37 = vadd.f32 %v2980_v33, %v3241_v19  ;;  %v2325_v33 = vld [vmem:[#allocation2] ss:$0 sm:$0xff] }
0x1361   :  { %v1933_v5 = vpop.permute.xlu1 %1932 }
0x1362   :  { %2680 = vmatmul.mubr.msk.f32.vlgmr.msra.gmra.mrb[20].mxu1 %vm244_vm2, %v1933_v5  ;;  %v3038_v5 = vmov 0  }
0x1363   :  { %2836 = vmatpush3.bf16.msra.mxu1 %v3251_v25  ;;  %2701 = vmatprep.mubr.msk.f32.mxu1 %vm3035_vm1, %v3036_v26 }
0x1364   :  { %2837 = vmatprep.subr.bf16.mxu1 %v3034_v23  ;;  %2851 = vset.pattern.permute.xlu0 %v3038_v5 }
0x1367   :  { %2839 = vmatpush3.bf16.msra.mxu1 %v3262_v31 }
0x1423   :  { %v1857_v7 = vpop.f32.mrb[18].mxu1  ;;  %v1927_v62 = vpop.f32.mrb[24].mxu0 }
0x1424   :  { %v2031_v8 = vadd.f32 %v1857_v7, %v213_v37  ;;  %v2659_v9 = vpop.f32.mrb[19].mxu1  ;;  %v2670_v1 = vpop.f32.mrb[25].mxu0 }
0x1426   :  { %2956 = vtanh.f32 %v2031_v8  ;;  %v2320_v18 = vmul.f32 -1.442695, %v2031_v8 }
0x1430   :  { %v2957_v25 = vpop.eup %2956 }
0x1431   :  { %2041 = vrot.lane.b32.xlu1 %v2957_v25, %s3032_s29 }
0x1435   :  { %v2002_v26 = vpop.f32.mrb[20].mxu1 }
0x1436   :  { %v2003_v10 = vadd.f32 %v2002_v26, %v1927_v62  ;;  %v2681_v23 = vpop.f32.mrb[21].mxu1 }
0x1438   :  { %v2006_v31 = vadd.f32 %v3191_v42, %v2003_v10 }
0x143a   :  { %2958 = vtanh.f32 %v2006_v31  ;;  %v2319_v13 = vmul.f32 -1.442695, %v2006_v31 }
0x143b   :  { %2960 = vpow2.f32 %v2320_v18 }
0x1444   :  { %v2959_v11 = vpop.eup %2958 }
0x1445   :  { %2016 = vrot.lane.b32.xlu0 %v2959_v11, %s3032_s29  ;;  %v2961_v19 = vpop.eup %2960 }
0x1446   :  { %v2035_v12 = vadd.f32 1.0, %v2961_v19 }
0x1448   :  { %2962 = vrcp.f32 %v2035_v12 }
0x1449   :  { %2964 = vpow2.f32 %v2319_v13 }
0x1452   :  { %v2963_v14 = vpop.eup %2962 }
0x1453   :  { %v2965_v22 = vpop.eup %2964  ;;  %v2039_v24 = vmul.f32 %v2963_v14, %v3449_v57 }
0x1454   :  { %v2010_v28 = vadd.f32 1.0, %v2965_v22 }
0x1456   :  { %2966 = vrcp.f32 %v2010_v28 }
0x1460   :  { %v2967_v29 = vpop.eup %2966 }
0x1461   :  { %v2014_v15 = vmul.f32 %v2967_v29, %v3454_v61 }
0x14a3   :  { %v2042_v16 = vpop.permute.xlu1 %2041 }
0x14a4   :  { %v2044_v21 = vmul.f32 %v2963_v14, %v2042_v16 }
0x14a6   :  { %2046 = vrot.lane.b32.xlu1 %v2044_v21, %s3033_s30 }
0x14b7   :  { %v2017_v30 = vpop.permute.xlu0 %2016 }
0x14b8   :  { %v2019_v32 = vmul.f32 %v2967_v29, %v2017_v30 }
0x14ba   :  { %2021 = vrot.lane.b32.xlu0 %v2019_v32, %s3033_s30 }
0x1518   :  { %v2047_v27 = vpop.permute.xlu1 %2046 }
0x1519   :  { %v2049_v34 = vadd.f32 %v2047_v27, %v2039_v24 }
0x151b   :  { %2968 = vtanh.f32 %v2049_v34 }
0x1525   :  { %v2969_v35 = vpop.eup %2968 }
0x1526   :  { %2052 = vrot.lane.b32.xlu1 %v2969_v35, %s3032_s29 }
0x152c   :  { %v2022_v36 = vpop.permute.xlu0 %2021 }
0x152d   :  { %v2024_v38 = vadd.f32 %v2022_v36, %v2014_v15 }
0x152f   :  { %2970 = vtanh.f32 %v2024_v38 }
0x1539   :  { %v2971_v39 = vpop.eup %2970 }
0x153a   :  { %2027 = vrot.lane.b32.xlu0 %v2971_v39, %s3032_s29 }
0x1598   :  { %v2053_v40 = vpop.permute.xlu1 %2052 }
0x1599   :  { %v2055_v41 = vmul.f32 %v2963_v14, %v2053_v40 }
0x159b   :  { %2057 = vrot.lane.b32.xlu0 %v2055_v41, %s3033_s30 }
0x15ac   :  { %v2028_v43 = vpop.permute.xlu0 %2027 }
0x15ad   :  { %v2030_v44 = vmul.f32 %v2967_v29, %v2028_v43 }
0x15af   :  { %2132 = vrot.lane.b32.xlu1 %v2030_v44, %s3033_s30 }
0x160d   :  { %v2058_v45 = vpop.permute.xlu0 %2057 }
0x160e   :  { %2691 = vmatmul.mubr.msk.f32.vlgmr.msra.gmra.mrb[26].mxu0 %vm244_vm2, %v2058_v45 }
0x1621   :  { %v2133_v6 = vpop.permute.xlu1 %2132 }
0x1622   :  { %2702 = vmatmul.mubr.msk.f32.vlgmr.msra.gmra.mrb[22].mxu1 %vm244_vm2, %v2133_v6 }
0x16e1   :  { %v2127_v20 = vpop.f32.mrb[26].mxu0 }
0x16e2   :  { %v2692_v46 = vpop.f32.mrb[27].mxu0 }
0x16f5   :  { %v2202_v47 = vpop.f32.mrb[22].mxu1 }
0x16f6   :  { %v2203_v48 = vadd.f32 %v2202_v47, %v2127_v20  ;;  %v2703_v49 = vpop.f32.mrb[23].mxu1 }
0x16f8   :  { %v2206_v50 = vadd.f32 %v3191_v42, %v2203_v48 }
0x16fa   :  { %2972 = vtanh.f32 %v2206_v50  ;;  %v2323_v52 = vmul.f32 -1.442695, %v2206_v50 }
0x16fc   :  { %2974 = vpow2.f32 %v2323_v52 }
0x1704   :  { %v2973_v51 = vpop.eup %2972 }
0x1705   :  { %2216 = vrot.lane.b32.xlu0 %v2973_v51, %s3032_s29 }
0x1706   :  { %v2975_v53 = vpop.eup %2974 }
0x1707   :  { %v2210_v54 = vadd.f32 1.0, %v2975_v53 }
0x1709   :  { %2976 = vrcp.f32 %v2210_v54 }
0x1713   :  { %v2977_v55 = vpop.eup %2976 }
0x1714   :  { %v2214_v42 = vmul.f32 %v2977_v55, %v2024_v38 }
0x1777   :  { %v2217_v56 = vpop.permute.xlu0 %2216 }
0x1778   :  { %v2219_v57 = vmul.f32 %v2977_v55, %v2217_v56 }
0x177a   :  { %2221 = vrot.lane.b32.xlu1 %v2219_v57, %s3033_s30 }
0x177e   :  { %2236 = vrot.lane.b32.xlu1 %v2324_v58, %s3037_s23 }
0x17ec   :  { %v2222_v59 = vpop.permute.xlu1 %2221 }
0x17ed   :  { %v2224_v60 = vadd.f32 %v2222_v59, %v2214_v42 }
0x17ef   :  { %2978 = vtanh.f32 %v2224_v60 }
0x17f0   :  { %v2237_v63 = vpop.permute.xlu1 %2236 }
0x17f9   :  { %v2979_v61 = vpop.eup %2978 }
0x17fa   :  { %2227 = vrot.lane.b32.xlu0 %v2979_v61, %s3032_s29  ;;  %s3003_s29 = scalar_lea.vmem %s2268_s4, 128 }
0x17fb   :  { %p3004_p8 = scmp.ne.s32.totalorder %s2268_s4, %s3003_s29  ;;  %p3009_p10 = scmp.lt.s32.totalorder %s3003_s29, %s3003_s29 }
0x17fd   :  { %p3010_p11 = por %p3009_p10, %p3008_p9 }
0x17ff   :  { %p3011_p12 = pnand %p3010_p11, %p3004_p8 }
0x186c   :  { %v2228_v17 = vpop.permute.xlu0 %2227 }
0x186d   :  { %v2230_v0 = vmul.f32 %v2977_v55, %v2228_v17 }
0x186f   :  { %v2239_v2 = vmul.f32 %v2237_v63, %v2230_v0 }
0x1871   :  { %2241 = vrot.lane.b32.xlu0 %v2239_v2, %s3033_s30 }
0x18e3   :  { %v2242_v3 = vpop.permute.xlu0 %2241 }
0x18e4   :  { %v2244_v4 = vsel %vm244_vm2, %v2242_v3, 0.0 }
0x18e5   :  { %2245 = vadd.xlane.f32.xlu1 %v2244_v4 }
0x1972   :  { %v2246_v37 = vpop.xlane.xlu1 %2245 }
0x1973   :  { %v2254_v7 = vadd.f32 %v2325_v33, %v2246_v37 }
0x1975   :  { %2257 = vperm.xlu0 %2851, %v2254_v7  }
0x19f4   :  { %v2258_v62 = vpop.permute.xlu0 %2257 }
0x19f5   :  { %2260 = vst [vmem:[#allocation6] sm:$0xff] %v2258_v62 }
0x19f6   :  { %3014 = shalt.err (!%p3011_p12)
}
0x19f7   :  { %s3015_s6 = scalar_lea.hbm %s3526_s9, 128 }
0x19f8   :  { %p3016_p13 = scmp.ne.s32.totalorder %s3526_s9, %s3015_s6  ;;  %p3019_p0 = scmp.lt.u32.totalorder %s3015_s6, %s3526_s9 }
0x19fa   :  { %p3021_p1 = pnand %p3019_p0, %p3016_p13 }
0x19fc   :  { %3024 = shalt.err (!%p3021_p1)
}
0x19fd   :  { %2270 = dma.vmem_to_hbm [thread:$0]  %s2268_s4, 128, %s3526_s9, [#allocation5]  }
0x19fe   :  { %3027 = dma.done.wait [#allocation5], 128  }
0x19ff   :  { %3028 = vsyncadd [#allocation5], 4294967168 }
0x1a00   :  { %2274 = vsyncpa [#allocation4], 1 }
0x1a01   :  { %2275 = vsyncpa [#allocation5], 1 }

</bundles_post_ra>
